<compile_context>
chip_gen: v7x
topology: tpu7x:2x2x1
jax: 0.10.0
libtpu: 0.0.40
codegen_flags: <defaults>
</compile_context>

<pallas_src>
import functools

import jax
import jax.numpy as jnp
from jax import lax
from jax.experimental import pallas as pl
from jax.experimental.pallas import tpu as pltpu

EPS = 1e-8  # custom InstanceNorm epsilon from fs_networks.py


def _resnet_block_kernel(x_ref, w1_ref, b1_ref, w2_ref, b2_ref,
                         g1_ref, s1_ref, g2_ref, s2_ref, out_ref,
                         *, H, W, C, compute_dtype):
    """Fused: [pad->conv3x3->IN->style->relu] -> [pad->conv3x3->IN->style] -> +residual,
    for one batch element, in (C, H*W) layout."""
    Hp, Wp = H + 2, W + 2
    S = H * W
    Sp = Hp * Wp

    x = x_ref[0].astype(jnp.float32)                      # (C, S), stays resident (residual)

    # Zero-extension tail so every tap shift is a static, in-bounds lane slice (built once,
    # shared by both stages).
    zpad = jnp.zeros((C, 2 * Wp + 2), compute_dtype)

    def stage(inp, w_ref, b_ref, g_ref, s_ref, relu):
        # inp: (C, S) float32, unpadded frame.
        # ---- reflection pad (ReflectionPad2d(1)) via lane-axis concats ----
        top = inp[:, W:2 * W]                             # row 1
        bot = inp[:, (H - 2) * W:(H - 1) * W]             # row H-2
        rows = jnp.concatenate([top, inp, bot], axis=1).reshape(C, Hp, W)
        xp = jnp.concatenate([rows[:, :, 1:2], rows, rows[:, :, W - 2:W - 1]], axis=2)
        xpf = xp.reshape(C, Sp).astype(compute_dtype)     # (C, Hp*Wp), matmul input dtype
        xpe = jnp.concatenate([xpf, zpad], axis=1)        # (C, Hp*Wp + 2*Wp + 2)

        # ---- 3x3 conv: 9 lane-shifted MXU matmuls, f32 accumulation ----
        w = w_ref[...]                                    # (3, 3, C_out, C_in), compute_dtype
        acc = jnp.zeros((C, Sp), jnp.float32)
        for dy in range(3):
            for dx in range(3):
                off = dy * Wp + dx
                acc = acc + jnp.dot(w[dy, dx], xpe[:, off:off + Sp],
                                    preferred_element_type=jnp.float32)

        # ---- drop the pad ring: only q = h*Wp + w with h<H, w<W are valid ----
        y = acc.reshape(C, Hp, Wp)[:, :H, :W].reshape(C, S)

        # conv bias (mathematically cancelled by InstanceNorm; kept for bitwise fidelity,
        # applied on the smaller valid slab)
        y = y + b_ref[...].astype(jnp.float32)            # (C, 1) broadcast

        # ---- InstanceNorm over spatial dims, per channel ----
        mean = jnp.mean(y, axis=1, keepdims=True)
        yc = y - mean
        var = jnp.mean(yc * yc, axis=1, keepdims=True)
        y = yc * lax.rsqrt(var + EPS)                     # rsqrt -> EUP slot

        # ---- ApplyStyle: precomputed gain = scale + 1, shift ----
        y = y * g_ref[0].astype(jnp.float32) + s_ref[0].astype(jnp.float32)
        if relu:
            y = jnp.maximum(y, 0.0)
        return y

    y = stage(x, w1_ref, b1_ref, g1_ref, s1_ref, relu=True)
    y = stage(y, w2_ref, b2_ref, g2_ref, s2_ref, relu=False)
    out_ref[0] = (x + y).astype(out_ref.dtype)


@functools.partial(jax.jit, static_argnames=("compute_dtype",))
def resnet_block_adain(x_nchw, dlatents, params, compute_dtype=jnp.bfloat16):
    """Pallas ResnetBlock_Adain.forward (padding_type='reflect'); NCHW in/out."""
    B, C, H, W = x_nchw.shape
    S = H * W
    xf = x_nchw.reshape(B, C, S)                          # NCHW -> (B, C, H*W), no data movement

    # ApplyStyle linears for the whole batch: one XLA GEMM each.
    def style(lw, lb):
        st = jnp.dot(dlatents, lw, precision=lax.Precision.HIGHEST) + lb   # (B, 2C)
        gain = (st[:, :C] + 1.0).reshape(B, C, 1)
        shift = st[:, C:].reshape(B, C, 1)
        return gain, shift

    g1, s1 = style(params["lw1"], params["lb1"])
    g2, s2 = style(params["lw2"], params["lb2"])

    # HWIO -> (kh, kw, C_out, C_in): each tap is a ready-to-use (Cout, Cin) matmul LHS.
    # Cast to the MXU compute dtype here (smaller DMA, no per-step in-kernel cast).
    w1 = jnp.transpose(params["w1"], (0, 1, 3, 2)).astype(compute_dtype)
    w2 = jnp.transpose(params["w2"], (0, 1, 3, 2)).astype(compute_dtype)
    b1 = params["b1"].reshape(C, 1)
    b2 = params["b2"].reshape(C, 1)

    kernel = functools.partial(_resnet_block_kernel, H=H, W=W, C=C,
                               compute_dtype=compute_dtype)

    act_spec = pl.BlockSpec((1, C, S), lambda b: (b, 0, 0))
    wspec = pl.BlockSpec((3, 3, C, C), lambda b: (0, 0, 0, 0))   # constant across grid
    bspec = pl.BlockSpec((C, 1), lambda b: (0, 0))
    stylespec = pl.BlockSpec((1, C, 1), lambda b: (b, 0, 0))

    out = pl.pallas_call(
        kernel,
        out_shape=jax.ShapeDtypeStruct((B, C, S), x_nchw.dtype),
        grid_spec=pltpu.PrefetchScalarGridSpec(
            num_scalar_prefetch=0,
            grid=(B,),
            in_specs=[act_spec,            # x (also the residual)
                      wspec, bspec,        # conv1
                      wspec, bspec,        # conv2
                      stylespec, stylespec,    # style1 gain / shift
                      stylespec, stylespec],   # style2 gain / shift
            out_specs=pl.BlockSpec((1, C, S), lambda b: (b, 0, 0)),
        ),
        compiler_params=pltpu.CompilerParams(
            dimension_semantics=("parallel",)),   # v7x: batch across both TensorCores
    )(xf, w1, b1, w2, b2, g1, s1, g2, s2)
    return out.reshape(B, C, H, W)


# ---------------- pure-JAX reference (independent lax.conv path) ----------------

def _ref_forward(x_nchw, dlatents, params, conv_dtype=jnp.float32):
    x = jnp.transpose(x_nchw, (0, 2, 3, 1)).astype(jnp.float32)   # NHWC

    def stage(inp, w, b, lw, lb, relu, res):
        C = inp.shape[-1]
        xp = jnp.pad(inp, ((0, 0), (1, 1), (1, 1), (0, 0)), mode="reflect")
        y = lax.conv_general_dilated(
            xp.astype(conv_dtype), w.astype(conv_dtype), (1, 1), "VALID",
            dimension_numbers=("NHWC", "HWIO", "NHWC"),
            preferred_element_type=jnp.float32,
            precision=lax.Precision.HIGHEST)
        y = y + b
        mean = jnp.mean(y, axis=(1, 2), keepdims=True)
        yc = y - mean
        var = jnp.mean(yc * yc, axis=(1, 2), keepdims=True)
        y = yc * lax.rsqrt(var + EPS)
        style = jnp.dot(dlatents, lw, precision=lax.Precision.HIGHEST) + lb
        scale = style[:, :C][:, None, None, :]
        shift = style[:, C:][:, None, None, :]
        y = y * (scale + 1.0) + shift
        if relu:
            y = jnp.maximum(y, 0.0)
        if res is not None:
            y = y + res
        return y

    y = stage(x, params["w1"], params["b1"], params["lw1"], params["lb1"], True, None)
    out = stage(y, params["w2"], params["b2"], params["lw2"], params["lb2"], False, x)
    return jnp.transpose(out, (0, 3, 1, 2))


# ---------------------------------- main ----------------------------------

if __name__ == "__main__":
    B, DIM, H, W, LATENT = 2, 4, 16, 16, 8

    key = jax.random.PRNGKey(0)
    ks = jax.random.split(key, 10)

    # Synthetic parameters (shapes from the PyTorch __init__):
    #   Conv2d(dim, dim, 3)   -> weight stored HWIO (3,3,dim,dim), bias (dim,)
    #   Linear(latent, 2*dim) -> stored transposed: (latent, 2*dim), (2*dim,)
    params = {
        "w1": 0.1 * jax.random.normal(ks[0], (3, 3, DIM, DIM), jnp.float32),
        "b1": 0.1 * jax.random.normal(ks[1], (DIM,), jnp.float32),
        "lw1": 0.1 * jax.random.normal(ks[2], (LATENT, 2 * DIM), jnp.float32),
        "lb1": 0.1 * jax.random.normal(ks[3], (2 * DIM,), jnp.float32),
        "w2": 0.1 * jax.random.normal(ks[4], (3, 3, DIM, DIM), jnp.float32),
        "b2": 0.1 * jax.random.normal(ks[5], (DIM,), jnp.float32),
        "lw2": 0.1 * jax.random.normal(ks[6], (LATENT, 2 * DIM), jnp.float32),
        "lb2": 0.1 * jax.random.normal(ks[7], (2 * DIM,), jnp.float32),
    }

    x = jax.random.normal(ks[8], (B, DIM, H, W), jnp.float32)      # NCHW like PyTorch
    dlatents = jax.random.normal(ks[9], (B, LATENT), jnp.float32)

    # 1) exact path: f32 MXU operands, tight tolerance (validates structure / padding / IN / style)
    out_f32 = jax.block_until_ready(resnet_block_adain(x, dlatents, params,
                                                       compute_dtype=jnp.float32))
    ref_f32 = jax.block_until_ready(_ref_forward(x, dlatents, params,
                                                 conv_dtype=jnp.float32))
    assert out_f32.shape == (B, DIM, H, W)
    err32 = float(jnp.max(jnp.abs(out_f32 - ref_f32)))
    assert jnp.allclose(out_f32, ref_f32, atol=1e-4, rtol=1e-4), \
        f"f32 path max abs err {err32}"

    # 2) fast path: bf16 MXU operands with f32 accumulation, vs a matching bf16 reference
    out_bf16 = jax.block_until_ready(resnet_block_adain(x, dlatents, params,
                                                        compute_dtype=jnp.bfloat16))
    ref_bf16 = jax.block_until_ready(_ref_forward(x, dlatents, params,
                                                  conv_dtype=jnp.bfloat16))
    errb = float(jnp.max(jnp.abs(out_bf16 - ref_bf16)))
    assert jnp.allclose(out_bf16, ref_bf16, atol=3e-2, rtol=3e-2), \
        f"bf16 path max abs err {errb}"

    print("KERNEL_OK")
</pallas_src>

<mosaic_0001>
module attributes {stable_mosaic.version = 11 : i64} {
  func.func @_resnet_block_kernel(%arg0: i32, %arg1: memref<1x4x256xf32, #tpu.memory_space<vmem>>, %arg2: memref<3x3x4x4xf32, #tpu.memory_space<vmem>>, %arg3: memref<4x1xf32, #tpu.memory_space<vmem>>, %arg4: memref<3x3x4x4xf32, #tpu.memory_space<vmem>>, %arg5: memref<4x1xf32, #tpu.memory_space<vmem>>, %arg6: memref<1x4x1xf32, #tpu.memory_space<vmem>>, %arg7: memref<1x4x1xf32, #tpu.memory_space<vmem>>, %arg8: memref<1x4x1xf32, #tpu.memory_space<vmem>>, %arg9: memref<1x4x1xf32, #tpu.memory_space<vmem>>, %arg10: memref<1x4x256xf32, #tpu.memory_space<vmem>>) attributes {dimension_semantics = [#tpu.dimension_semantics<parallel>], iteration_bounds = array<i64: 2>, scalar_prefetch = 0 : i64, scratch_operands = 0 : i64, tpu.core_type = #tpu.core_type<tc>, window_params = [{transform_indices = @transform_0, window_bounds = array<i64: 1, 4, 256>}, {pipeline_mode = #tpu.pipeline_mode<synchronous>, transform_indices = @transform_1, window_bounds = array<i64: 3, 3, 4, 4>}, {pipeline_mode = #tpu.pipeline_mode<synchronous>, transform_indices = @transform_2, window_bounds = array<i64: 4, 1>}, {pipeline_mode = #tpu.pipeline_mode<synchronous>, transform_indices = @transform_3, window_bounds = array<i64: 3, 3, 4, 4>}, {pipeline_mode = #tpu.pipeline_mode<synchronous>, transform_indices = @transform_4, window_bounds = array<i64: 4, 1>}, {transform_indices = @transform_5, window_bounds = array<i64: 1, 4, 1>}, {transform_indices = @transform_6, window_bounds = array<i64: 1, 4, 1>}, {transform_indices = @transform_7, window_bounds = array<i64: 1, 4, 1>}, {transform_indices = @transform_8, window_bounds = array<i64: 1, 4, 1>}, {transform_indices = @transform_9, window_bounds = array<i64: 1, 4, 256>}]} {
    %c0 = arith.constant 0 : index
    %c0_0 = arith.constant 0 : index
    %c0_1 = arith.constant 0 : index
    %0 = vector.load %arg1[%c0, %c0_0, %c0_1] : memref<1x4x256xf32, #tpu.memory_space<vmem>>, vector<1x4x256xf32>
    %1 = vector.shape_cast %0 : vector<1x4x256xf32> to vector<4x256xf32>
    %cst = arith.constant 0.000000e+00 : f32
    %2 = vector.broadcast %cst : f32 to vector<4x38xf32>
    %3 = vector.extract_strided_slice %1 {offsets = [0, 16], sizes = [4, 16], strides = [1, 1]} : vector<4x256xf32> to vector<4x16xf32>
    %4 = vector.extract_strided_slice %1 {offsets = [0, 224], sizes = [4, 16], strides = [1, 1]} : vector<4x256xf32> to vector<4x16xf32>
    %5 = tpu.concatenate %3, %1, %4 in 1 : vector<4x16xf32>, vector<4x256xf32>, vector<4x16xf32> -> vector<4x288xf32>
    %6 = vector.shape_cast %5 : vector<4x288xf32> to vector<4x18x16xf32>
    %7 = vector.extract_strided_slice %6 {offsets = [0, 0, 1], sizes = [4, 18, 1], strides = [1, 1, 1]} : vector<4x18x16xf32> to vector<4x18x1xf32>
    %8 = vector.extract_strided_slice %6 {offsets = [0, 0, 14], sizes = [4, 18, 1], strides = [1, 1, 1]} : vector<4x18x16xf32> to vector<4x18x1xf32>
    %9 = tpu.concatenate %7, %6, %8 in 2 : vector<4x18x1xf32>, vector<4x18x16xf32>, vector<4x18x1xf32> -> vector<4x18x18xf32>
    %10 = vector.shape_cast %9 : vector<4x18x18xf32> to vector<4x324xf32>
    %11 = tpu.concatenate %10, %2 in 1 : vector<4x324xf32>, vector<4x38xf32> -> vector<4x362xf32>
    %c0_2 = arith.constant 0 : index
    %c0_3 = arith.constant 0 : index
    %c0_4 = arith.constant 0 : index
    %c0_5 = arith.constant 0 : index
    %12 = vector.load %arg2[%c0_2, %c0_3, %c0_4, %c0_5] : memref<3x3x4x4xf32, #tpu.memory_space<vmem>>, vector<3x3x4x4xf32>
    %cst_6 = arith.constant 0.000000e+00 : f32
    %13 = vector.broadcast %cst_6 : f32 to vector<4x324xf32>
    %14 = vector.extract_strided_slice %12 {offsets = [0, 0, 0, 0], sizes = [1, 1, 4, 4], strides = [1, 1, 1, 1]} : vector<3x3x4x4xf32> to vector<1x1x4x4xf32>
    %15 = vector.shape_cast %14 : vector<1x1x4x4xf32> to vector<4x4xf32>
    %16 = vector.extract_strided_slice %11 {offsets = [0, 0], sizes = [4, 324], strides = [1, 1]} : vector<4x362xf32> to vector<4x324xf32>
    %cst_7 = arith.constant dense<0.000000e+00> : vector<4x324xf32>
    %17 = tpu.matmul %15, %16, %cst_7 {dimension_numbers = #tpu.dot_dimension_numbers<[1], [0], [0], [1], [0, 0, 1, 1], [], []>} : vector<4x4xf32>, vector<4x324xf32>, vector<4x324xf32> -> vector<4x324xf32>
    %18 = arith.addf %13, %17 : vector<4x324xf32>
    %19 = vector.extract_strided_slice %12 {offsets = [0, 1, 0, 0], sizes = [1, 1, 4, 4], strides = [1, 1, 1, 1]} : vector<3x3x4x4xf32> to vector<1x1x4x4xf32>
    %20 = vector.shape_cast %19 : vector<1x1x4x4xf32> to vector<4x4xf32>
    %21 = vector.extract_strided_slice %11 {offsets = [0, 1], sizes = [4, 324], strides = [1, 1]} : vector<4x362xf32> to vector<4x324xf32>
    %cst_8 = arith.constant dense<0.000000e+00> : vector<4x324xf32>
    %22 = tpu.matmul %20, %21, %cst_8 {dimension_numbers = #tpu.dot_dimension_numbers<[1], [0], [0], [1], [0, 0, 1, 1], [], []>} : vector<4x4xf32>, vector<4x324xf32>, vector<4x324xf32> -> vector<4x324xf32>
    %23 = arith.addf %18, %22 : vector<4x324xf32>
    %24 = vector.extract_strided_slice %12 {offsets = [0, 2, 0, 0], sizes = [1, 1, 4, 4], strides = [1, 1, 1, 1]} : vector<3x3x4x4xf32> to vector<1x1x4x4xf32>
    %25 = vector.shape_cast %24 : vector<1x1x4x4xf32> to vector<4x4xf32>
    %26 = vector.extract_strided_slice %11 {offsets = [0, 2], sizes = [4, 324], strides = [1, 1]} : vector<4x362xf32> to vector<4x324xf32>
    %cst_9 = arith.constant dense<0.000000e+00> : vector<4x324xf32>
    %27 = tpu.matmul %25, %26, %cst_9 {dimension_numbers = #tpu.dot_dimension_numbers<[1], [0], [0], [1], [0, 0, 1, 1], [], []>} : vector<4x4xf32>, vector<4x324xf32>, vector<4x324xf32> -> vector<4x324xf32>
    %28 = arith.addf %23, %27 : vector<4x324xf32>
    %29 = vector.extract_strided_slice %12 {offsets = [1, 0, 0, 0], sizes = [1, 1, 4, 4], strides = [1, 1, 1, 1]} : vector<3x3x4x4xf32> to vector<1x1x4x4xf32>
    %30 = vector.shape_cast %29 : vector<1x1x4x4xf32> to vector<4x4xf32>
    %31 = vector.extract_strided_slice %11 {offsets = [0, 18], sizes = [4, 324], strides = [1, 1]} : vector<4x362xf32> to vector<4x324xf32>
    %cst_10 = arith.constant dense<0.000000e+00> : vector<4x324xf32>
    %32 = tpu.matmul %30, %31, %cst_10 {dimension_numbers = #tpu.dot_dimension_numbers<[1], [0], [0], [1], [0, 0, 1, 1], [], []>} : vector<4x4xf32>, vector<4x324xf32>, vector<4x324xf32> -> vector<4x324xf32>
    %33 = arith.addf %28, %32 : vector<4x324xf32>
    %34 = vector.extract_strided_slice %12 {offsets = [1, 1, 0, 0], sizes = [1, 1, 4, 4], strides = [1, 1, 1, 1]} : vector<3x3x4x4xf32> to vector<1x1x4x4xf32>
    %35 = vector.shape_cast %34 : vector<1x1x4x4xf32> to vector<4x4xf32>
    %36 = vector.extract_strided_slice %11 {offsets = [0, 19], sizes = [4, 324], strides = [1, 1]} : vector<4x362xf32> to vector<4x324xf32>
    %cst_11 = arith.constant dense<0.000000e+00> : vector<4x324xf32>
    %37 = tpu.matmul %35, %36, %cst_11 {dimension_numbers = #tpu.dot_dimension_numbers<[1], [0], [0], [1], [0, 0, 1, 1], [], []>} : vector<4x4xf32>, vector<4x324xf32>, vector<4x324xf32> -> vector<4x324xf32>
    %38 = arith.addf %33, %37 : vector<4x324xf32>
    %39 = vector.extract_strided_slice %12 {offsets = [1, 2, 0, 0], sizes = [1, 1, 4, 4], strides = [1, 1, 1, 1]} : vector<3x3x4x4xf32> to vector<1x1x4x4xf32>
    %40 = vector.shape_cast %39 : vector<1x1x4x4xf32> to vector<4x4xf32>
    %41 = vector.extract_strided_slice %11 {offsets = [0, 20], sizes = [4, 324], strides = [1, 1]} : vector<4x362xf32> to vector<4x324xf32>
    %cst_12 = arith.constant dense<0.000000e+00> : vector<4x324xf32>
    %42 = tpu.matmul %40, %41, %cst_12 {dimension_numbers = #tpu.dot_dimension_numbers<[1], [0], [0], [1], [0, 0, 1, 1], [], []>} : vector<4x4xf32>, vector<4x324xf32>, vector<4x324xf32> -> vector<4x324xf32>
    %43 = arith.addf %38, %42 : vector<4x324xf32>
    %44 = vector.extract_strided_slice %12 {offsets = [2, 0, 0, 0], sizes = [1, 1, 4, 4], strides = [1, 1, 1, 1]} : vector<3x3x4x4xf32> to vector<1x1x4x4xf32>
    %45 = vector.shape_cast %44 : vector<1x1x4x4xf32> to vector<4x4xf32>
    %46 = vector.extract_strided_slice %11 {offsets = [0, 36], sizes = [4, 324], strides = [1, 1]} : vector<4x362xf32> to vector<4x324xf32>
    %cst_13 = arith.constant dense<0.000000e+00> : vector<4x324xf32>
    %47 = tpu.matmul %45, %46, %cst_13 {dimension_numbers = #tpu.dot_dimension_numbers<[1], [0], [0], [1], [0, 0, 1, 1], [], []>} : vector<4x4xf32>, vector<4x324xf32>, vector<4x324xf32> -> vector<4x324xf32>
    %48 = arith.addf %43, %47 : vector<4x324xf32>
    %49 = vector.extract_strided_slice %12 {offsets = [2, 1, 0, 0], sizes = [1, 1, 4, 4], strides = [1, 1, 1, 1]} : vector<3x3x4x4xf32> to vector<1x1x4x4xf32>
    %50 = vector.shape_cast %49 : vector<1x1x4x4xf32> to vector<4x4xf32>
    %51 = vector.extract_strided_slice %11 {offsets = [0, 37], sizes = [4, 324], strides = [1, 1]} : vector<4x362xf32> to vector<4x324xf32>
    %cst_14 = arith.constant dense<0.000000e+00> : vector<4x324xf32>
    %52 = tpu.matmul %50, %51, %cst_14 {dimension_numbers = #tpu.dot_dimension_numbers<[1], [0], [0], [1], [0, 0, 1, 1], [], []>} : vector<4x4xf32>, vector<4x324xf32>, vector<4x324xf32> -> vector<4x324xf32>
    %53 = arith.addf %48, %52 : vector<4x324xf32>
    %54 = vector.extract_strided_slice %12 {offsets = [2, 2, 0, 0], sizes = [1, 1, 4, 4], strides = [1, 1, 1, 1]} : vector<3x3x4x4xf32> to vector<1x1x4x4xf32>
    %55 = vector.shape_cast %54 : vector<1x1x4x4xf32> to vector<4x4xf32>
    %56 = vector.extract_strided_slice %11 {offsets = [0, 38], sizes = [4, 324], strides = [1, 1]} : vector<4x362xf32> to vector<4x324xf32>
    %cst_15 = arith.constant dense<0.000000e+00> : vector<4x324xf32>
    %57 = tpu.matmul %55, %56, %cst_15 {dimension_numbers = #tpu.dot_dimension_numbers<[1], [0], [0], [1], [0, 0, 1, 1], [], []>} : vector<4x4xf32>, vector<4x324xf32>, vector<4x324xf32> -> vector<4x324xf32>
    %58 = arith.addf %53, %57 : vector<4x324xf32>
    %59 = vector.shape_cast %58 : vector<4x324xf32> to vector<4x18x18xf32>
    %60 = vector.extract_strided_slice %59 {offsets = [0, 0, 0], sizes = [4, 16, 16], strides = [1, 1, 1]} : vector<4x18x18xf32> to vector<4x16x16xf32>
    %61 = vector.shape_cast %60 : vector<4x16x16xf32> to vector<4x256xf32>
    %c0_16 = arith.constant 0 : index
    %c0_17 = arith.constant 0 : index
    %62 = vector.load %arg3[%c0_16, %c0_17] : memref<4x1xf32, #tpu.memory_space<vmem>>, vector<4x1xf32>
    %63 = vector.broadcast %62 : vector<4x1xf32> to vector<4x256xf32>
    %64 = arith.addf %61, %63 : vector<4x256xf32>
    %cst_18 = arith.constant dense<0.000000e+00> : vector<4xf32>
    %65 = vector.multi_reduction <add>, %64, %cst_18 [1] : vector<4x256xf32> to vector<4xf32>
    %66 = vector.shape_cast %65 : vector<4xf32> to vector<4x1xf32>
    %cst_19 = arith.constant 2.560000e+02 : f32
    %67 = vector.broadcast %cst_19 : f32 to vector<4x1xf32>
    %68 = arith.divf %66, %67 : vector<4x1xf32>
    %69 = vector.broadcast %68 : vector<4x1xf32> to vector<4x256xf32>
    %70 = arith.subf %64, %69 : vector<4x256xf32>
    %71 = arith.mulf %70, %70 : vector<4x256xf32>
    %cst_20 = arith.constant dense<0.000000e+00> : vector<4xf32>
    %72 = vector.multi_reduction <add>, %71, %cst_20 [1] : vector<4x256xf32> to vector<4xf32>
    %73 = vector.shape_cast %72 : vector<4xf32> to vector<4x1xf32>
    %cst_21 = arith.constant 2.560000e+02 : f32
    %74 = vector.broadcast %cst_21 : f32 to vector<4x1xf32>
    %75 = arith.divf %73, %74 : vector<4x1xf32>
    %cst_22 = arith.constant 9.99999993E-9 : f32
    %76 = vector.broadcast %cst_22 : f32 to vector<4x1xf32>
    %77 = arith.addf %75, %76 : vector<4x1xf32>
    %78 = math.rsqrt %77 : vector<4x1xf32>
    %79 = vector.broadcast %78 : vector<4x1xf32> to vector<4x256xf32>
    %80 = arith.mulf %70, %79 : vector<4x256xf32>
    %c0_23 = arith.constant 0 : index
    %c0_24 = arith.constant 0 : index
    %c0_25 = arith.constant 0 : index
    %81 = vector.load %arg6[%c0_23, %c0_24, %c0_25] : memref<1x4x1xf32, #tpu.memory_space<vmem>>, vector<1x4x1xf32>
    %82 = vector.shape_cast %81 : vector<1x4x1xf32> to vector<4x1xf32>
    %83 = vector.broadcast %82 : vector<4x1xf32> to vector<4x256xf32>
    %84 = arith.mulf %80, %83 : vector<4x256xf32>
    %c0_26 = arith.constant 0 : index
    %c0_27 = arith.constant 0 : index
    %c0_28 = arith.constant 0 : index
    %85 = vector.load %arg7[%c0_26, %c0_27, %c0_28] : memref<1x4x1xf32, #tpu.memory_space<vmem>>, vector<1x4x1xf32>
    %86 = vector.shape_cast %85 : vector<1x4x1xf32> to vector<4x1xf32>
    %87 = vector.broadcast %86 : vector<4x1xf32> to vector<4x256xf32>
    %88 = arith.addf %84, %87 : vector<4x256xf32>
    %cst_29 = arith.constant 0.000000e+00 : f32
    %89 = vector.broadcast %cst_29 : f32 to vector<4x256xf32>
    %90 = arith.maximumf %88, %89 : vector<4x256xf32>
    %91 = vector.extract_strided_slice %90 {offsets = [0, 16], sizes = [4, 16], strides = [1, 1]} : vector<4x256xf32> to vector<4x16xf32>
    %92 = vector.extract_strided_slice %90 {offsets = [0, 224], sizes = [4, 16], strides = [1, 1]} : vector<4x256xf32> to vector<4x16xf32>
    %93 = tpu.concatenate %91, %90, %92 in 1 : vector<4x16xf32>, vector<4x256xf32>, vector<4x16xf32> -> vector<4x288xf32>
    %94 = vector.shape_cast %93 : vector<4x288xf32> to vector<4x18x16xf32>
    %95 = vector.extract_strided_slice %94 {offsets = [0, 0, 1], sizes = [4, 18, 1], strides = [1, 1, 1]} : vector<4x18x16xf32> to vector<4x18x1xf32>
    %96 = vector.extract_strided_slice %94 {offsets = [0, 0, 14], sizes = [4, 18, 1], strides = [1, 1, 1]} : vector<4x18x16xf32> to vector<4x18x1xf32>
    %97 = tpu.concatenate %95, %94, %96 in 2 : vector<4x18x1xf32>, vector<4x18x16xf32>, vector<4x18x1xf32> -> vector<4x18x18xf32>
    %98 = vector.shape_cast %97 : vector<4x18x18xf32> to vector<4x324xf32>
    %99 = tpu.concatenate %98, %2 in 1 : vector<4x324xf32>, vector<4x38xf32> -> vector<4x362xf32>
    %c0_30 = arith.constant 0 : index
    %c0_31 = arith.constant 0 : index
    %c0_32 = arith.constant 0 : index
    %c0_33 = arith.constant 0 : index
    %100 = vector.load %arg4[%c0_30, %c0_31, %c0_32, %c0_33] : memref<3x3x4x4xf32, #tpu.memory_space<vmem>>, vector<3x3x4x4xf32>
    %cst_34 = arith.constant 0.000000e+00 : f32
    %101 = vector.broadcast %cst_34 : f32 to vector<4x324xf32>
    %102 = vector.extract_strided_slice %100 {offsets = [0, 0, 0, 0], sizes = [1, 1, 4, 4], strides = [1, 1, 1, 1]} : vector<3x3x4x4xf32> to vector<1x1x4x4xf32>
    %103 = vector.shape_cast %102 : vector<1x1x4x4xf32> to vector<4x4xf32>
    %104 = vector.extract_strided_slice %99 {offsets = [0, 0], sizes = [4, 324], strides = [1, 1]} : vector<4x362xf32> to vector<4x324xf32>
    %cst_35 = arith.constant dense<0.000000e+00> : vector<4x324xf32>
    %105 = tpu.matmul %103, %104, %cst_35 {dimension_numbers = #tpu.dot_dimension_numbers<[1], [0], [0], [1], [0, 0, 1, 1], [], []>} : vector<4x4xf32>, vector<4x324xf32>, vector<4x324xf32> -> vector<4x324xf32>
    %106 = arith.addf %101, %105 : vector<4x324xf32>
    %107 = vector.extract_strided_slice %100 {offsets = [0, 1, 0, 0], sizes = [1, 1, 4, 4], strides = [1, 1, 1, 1]} : vector<3x3x4x4xf32> to vector<1x1x4x4xf32>
    %108 = vector.shape_cast %107 : vector<1x1x4x4xf32> to vector<4x4xf32>
    %109 = vector.extract_strided_slice %99 {offsets = [0, 1], sizes = [4, 324], strides = [1, 1]} : vector<4x362xf32> to vector<4x324xf32>
    %cst_36 = arith.constant dense<0.000000e+00> : vector<4x324xf32>
    %110 = tpu.matmul %108, %109, %cst_36 {dimension_numbers = #tpu.dot_dimension_numbers<[1], [0], [0], [1], [0, 0, 1, 1], [], []>} : vector<4x4xf32>, vector<4x324xf32>, vector<4x324xf32> -> vector<4x324xf32>
    %111 = arith.addf %106, %110 : vector<4x324xf32>
    %112 = vector.extract_strided_slice %100 {offsets = [0, 2, 0, 0], sizes = [1, 1, 4, 4], strides = [1, 1, 1, 1]} : vector<3x3x4x4xf32> to vector<1x1x4x4xf32>
    %113 = vector.shape_cast %112 : vector<1x1x4x4xf32> to vector<4x4xf32>
    %114 = vector.extract_strided_slice %99 {offsets = [0, 2], sizes = [4, 324], strides = [1, 1]} : vector<4x362xf32> to vector<4x324xf32>
    %cst_37 = arith.constant dense<0.000000e+00> : vector<4x324xf32>
    %115 = tpu.matmul %113, %114, %cst_37 {dimension_numbers = #tpu.dot_dimension_numbers<[1], [0], [0], [1], [0, 0, 1, 1], [], []>} : vector<4x4xf32>, vector<4x324xf32>, vector<4x324xf32> -> vector<4x324xf32>
    %116 = arith.addf %111, %115 : vector<4x324xf32>
    %117 = vector.extract_strided_slice %100 {offsets = [1, 0, 0, 0], sizes = [1, 1, 4, 4], strides = [1, 1, 1, 1]} : vector<3x3x4x4xf32> to vector<1x1x4x4xf32>
    %118 = vector.shape_cast %117 : vector<1x1x4x4xf32> to vector<4x4xf32>
    %119 = vector.extract_strided_slice %99 {offsets = [0, 18], sizes = [4, 324], strides = [1, 1]} : vector<4x362xf32> to vector<4x324xf32>
    %cst_38 = arith.constant dense<0.000000e+00> : vector<4x324xf32>
    %120 = tpu.matmul %118, %119, %cst_38 {dimension_numbers = #tpu.dot_dimension_numbers<[1], [0], [0], [1], [0, 0, 1, 1], [], []>} : vector<4x4xf32>, vector<4x324xf32>, vector<4x324xf32> -> vector<4x324xf32>
    %121 = arith.addf %116, %120 : vector<4x324xf32>
    %122 = vector.extract_strided_slice %100 {offsets = [1, 1, 0, 0], sizes = [1, 1, 4, 4], strides = [1, 1, 1, 1]} : vector<3x3x4x4xf32> to vector<1x1x4x4xf32>
    %123 = vector.shape_cast %122 : vector<1x1x4x4xf32> to vector<4x4xf32>
    %124 = vector.extract_strided_slice %99 {offsets = [0, 19], sizes = [4, 324], strides = [1, 1]} : vector<4x362xf32> to vector<4x324xf32>
    %cst_39 = arith.constant dense<0.000000e+00> : vector<4x324xf32>
    %125 = tpu.matmul %123, %124, %cst_39 {dimension_numbers = #tpu.dot_dimension_numbers<[1], [0], [0], [1], [0, 0, 1, 1], [], []>} : vector<4x4xf32>, vector<4x324xf32>, vector<4x324xf32> -> vector<4x324xf32>
    %126 = arith.addf %121, %125 : vector<4x324xf32>
    %127 = vector.extract_strided_slice %100 {offsets = [1, 2, 0, 0], sizes = [1, 1, 4, 4], strides = [1, 1, 1, 1]} : vector<3x3x4x4xf32> to vector<1x1x4x4xf32>
    %128 = vector.shape_cast %127 : vector<1x1x4x4xf32> to vector<4x4xf32>
    %129 = vector.extract_strided_slice %99 {offsets = [0, 20], sizes = [4, 324], strides = [1, 1]} : vector<4x362xf32> to vector<4x324xf32>
    %cst_40 = arith.constant dense<0.000000e+00> : vector<4x324xf32>
    %130 = tpu.matmul %128, %129, %cst_40 {dimension_numbers = #tpu.dot_dimension_numbers<[1], [0], [0], [1], [0, 0, 1, 1], [], []>} : vector<4x4xf32>, vector<4x324xf32>, vector<4x324xf32> -> vector<4x324xf32>
    %131 = arith.addf %126, %130 : vector<4x324xf32>
    %132 = vector.extract_strided_slice %100 {offsets = [2, 0, 0, 0], sizes = [1, 1, 4, 4], strides = [1, 1, 1, 1]} : vector<3x3x4x4xf32> to vector<1x1x4x4xf32>
    %133 = vector.shape_cast %132 : vector<1x1x4x4xf32> to vector<4x4xf32>
    %134 = vector.extract_strided_slice %99 {offsets = [0, 36], sizes = [4, 324], strides = [1, 1]} : vector<4x362xf32> to vector<4x324xf32>
    %cst_41 = arith.constant dense<0.000000e+00> : vector<4x324xf32>
    %135 = tpu.matmul %133, %134, %cst_41 {dimension_numbers = #tpu.dot_dimension_numbers<[1], [0], [0], [1], [0, 0, 1, 1], [], []>} : vector<4x4xf32>, vector<4x324xf32>, vector<4x324xf32> -> vector<4x324xf32>
    %136 = arith.addf %131, %135 : vector<4x324xf32>
    %137 = vector.extract_strided_slice %100 {offsets = [2, 1, 0, 0], sizes = [1, 1, 4, 4], strides = [1, 1, 1, 1]} : vector<3x3x4x4xf32> to vector<1x1x4x4xf32>
    %138 = vector.shape_cast %137 : vector<1x1x4x4xf32> to vector<4x4xf32>
    %139 = vector.extract_strided_slice %99 {offsets = [0, 37], sizes = [4, 324], strides = [1, 1]} : vector<4x362xf32> to vector<4x324xf32>
    %cst_42 = arith.constant dense<0.000000e+00> : vector<4x324xf32>
    %140 = tpu.matmul %138, %139, %cst_42 {dimension_numbers = #tpu.dot_dimension_numbers<[1], [0], [0], [1], [0, 0, 1, 1], [], []>} : vector<4x4xf32>, vector<4x324xf32>, vector<4x324xf32> -> vector<4x324xf32>
    %141 = arith.addf %136, %140 : vector<4x324xf32>
    %142 = vector.extract_strided_slice %100 {offsets = [2, 2, 0, 0], sizes = [1, 1, 4, 4], strides = [1, 1, 1, 1]} : vector<3x3x4x4xf32> to vector<1x1x4x4xf32>
    %143 = vector.shape_cast %142 : vector<1x1x4x4xf32> to vector<4x4xf32>
    %144 = vector.extract_strided_slice %99 {offsets = [0, 38], sizes = [4, 324], strides = [1, 1]} : vector<4x362xf32> to vector<4x324xf32>
    %cst_43 = arith.constant dense<0.000000e+00> : vector<4x324xf32>
    %145 = tpu.matmul %143, %144, %cst_43 {dimension_numbers = #tpu.dot_dimension_numbers<[1], [0], [0], [1], [0, 0, 1, 1], [], []>} : vector<4x4xf32>, vector<4x324xf32>, vector<4x324xf32> -> vector<4x324xf32>
    %146 = arith.addf %141, %145 : vector<4x324xf32>
    %147 = vector.shape_cast %146 : vector<4x324xf32> to vector<4x18x18xf32>
    %148 = vector.extract_strided_slice %147 {offsets = [0, 0, 0], sizes = [4, 16, 16], strides = [1, 1, 1]} : vector<4x18x18xf32> to vector<4x16x16xf32>
    %149 = vector.shape_cast %148 : vector<4x16x16xf32> to vector<4x256xf32>
    %c0_44 = arith.constant 0 : index
    %c0_45 = arith.constant 0 : index
    %150 = vector.load %arg5[%c0_44, %c0_45] : memref<4x1xf32, #tpu.memory_space<vmem>>, vector<4x1xf32>
    %151 = vector.broadcast %150 : vector<4x1xf32> to vector<4x256xf32>
    %152 = arith.addf %149, %151 : vector<4x256xf32>
    %cst_46 = arith.constant dense<0.000000e+00> : vector<4xf32>
    %153 = vector.multi_reduction <add>, %152, %cst_46 [1] : vector<4x256xf32> to vector<4xf32>
    %154 = vector.shape_cast %153 : vector<4xf32> to vector<4x1xf32>
    %cst_47 = arith.constant 2.560000e+02 : f32
    %155 = vector.broadcast %cst_47 : f32 to vector<4x1xf32>
    %156 = arith.divf %154, %155 : vector<4x1xf32>
    %157 = vector.broadcast %156 : vector<4x1xf32> to vector<4x256xf32>
    %158 = arith.subf %152, %157 : vector<4x256xf32>
    %159 = arith.mulf %158, %158 : vector<4x256xf32>
    %cst_48 = arith.constant dense<0.000000e+00> : vector<4xf32>
    %160 = vector.multi_reduction <add>, %159, %cst_48 [1] : vector<4x256xf32> to vector<4xf32>
    %161 = vector.shape_cast %160 : vector<4xf32> to vector<4x1xf32>
    %cst_49 = arith.constant 2.560000e+02 : f32
    %162 = vector.broadcast %cst_49 : f32 to vector<4x1xf32>
    %163 = arith.divf %161, %162 : vector<4x1xf32>
    %cst_50 = arith.constant 9.99999993E-9 : f32
    %164 = vector.broadcast %cst_50 : f32 to vector<4x1xf32>
    %165 = arith.addf %163, %164 : vector<4x1xf32>
    %166 = math.rsqrt %165 : vector<4x1xf32>
    %167 = vector.broadcast %166 : vector<4x1xf32> to vector<4x256xf32>
    %168 = arith.mulf %158, %167 : vector<4x256xf32>
    %c0_51 = arith.constant 0 : index
    %c0_52 = arith.constant 0 : index
    %c0_53 = arith.constant 0 : index
    %169 = vector.load %arg8[%c0_51, %c0_52, %c0_53] : memref<1x4x1xf32, #tpu.memory_space<vmem>>, vector<1x4x1xf32>
    %170 = vector.shape_cast %169 : vector<1x4x1xf32> to vector<4x1xf32>
    %171 = vector.broadcast %170 : vector<4x1xf32> to vector<4x256xf32>
    %172 = arith.mulf %168, %171 : vector<4x256xf32>
    %c0_54 = arith.constant 0 : index
    %c0_55 = arith.constant 0 : index
    %c0_56 = arith.constant 0 : index
    %173 = vector.load %arg9[%c0_54, %c0_55, %c0_56] : memref<1x4x1xf32, #tpu.memory_space<vmem>>, vector<1x4x1xf32>
    %174 = vector.shape_cast %173 : vector<1x4x1xf32> to vector<4x1xf32>
    %175 = vector.broadcast %174 : vector<4x1xf32> to vector<4x256xf32>
    %176 = arith.addf %172, %175 : vector<4x256xf32>
    %177 = arith.addf %1, %176 : vector<4x256xf32>
    %c0_57 = arith.constant 0 : index
    %c0_58 = arith.constant 0 : index
    %c0_59 = arith.constant 0 : index
    %178 = vector.load %arg10[%c0_57, %c0_58, %c0_59] : memref<1x4x256xf32, #tpu.memory_space<vmem>>, vector<1x4x256xf32>
    %179 = vector.shape_cast %178 : vector<1x4x256xf32> to vector<4x256xf32>
    %180 = vector.shape_cast %177 : vector<4x256xf32> to vector<1x4x256xf32>
    tpu.vector_store %arg10[%c0_57, %c0_58, %c0_59], %180 {strides = array<i32>} : memref<1x4x256xf32, #tpu.memory_space<vmem>>, vector<1x4x256xf32>,
    return
  }
  func.func @transform_0(%arg0: i32) -> (i32, i32, i32) {
    %c0_i32 = arith.constant 0 : i32
    %c0_i32_0 = arith.constant 0 : i32
    %c0_i32_1 = arith.constant 0 : i32
    return %arg0, %c0_i32, %c0_i32_0 : i32, i32, i32
  }
  func.func @transform_1(%arg0: i32) -> (i32, i32, i32, i32) {
    %c0_i32 = arith.constant 0 : i32
    %c0_i32_0 = arith.constant 0 : i32
    %c0_i32_1 = arith.constant 0 : i32
    %c0_i32_2 = arith.constant 0 : i32
    %c0_i32_3 = arith.constant 0 : i32
    return %c0_i32, %c0_i32_0, %c0_i32_1, %c0_i32_2 : i32, i32, i32, i32
  }
  func.func @transform_2(%arg0: i32) -> (i32, i32) {
    %c0_i32 = arith.constant 0 : i32
    %c0_i32_0 = arith.constant 0 : i32
    %c0_i32_1 = arith.constant 0 : i32
    return %c0_i32, %c0_i32_0 : i32, i32
  }
  func.func @transform_3(%arg0: i32) -> (i32, i32, i32, i32) {
    %c0_i32 = arith.constant 0 : i32
    %c0_i32_0 = arith.constant 0 : i32
    %c0_i32_1 = arith.constant 0 : i32
    %c0_i32_2 = arith.constant 0 : i32
    %c0_i32_3 = arith.constant 0 : i32
    return %c0_i32, %c0_i32_0, %c0_i32_1, %c0_i32_2 : i32, i32, i32, i32
  }
  func.func @transform_4(%arg0: i32) -> (i32, i32) {
    %c0_i32 = arith.constant 0 : i32
    %c0_i32_0 = arith.constant 0 : i32
    %c0_i32_1 = arith.constant 0 : i32
    return %c0_i32, %c0_i32_0 : i32, i32
  }
  func.func @transform_5(%arg0: i32) -> (i32, i32, i32) {
    %c0_i32 = arith.constant 0 : i32
    %c0_i32_0 = arith.constant 0 : i32
    %c0_i32_1 = arith.constant 0 : i32
    return %arg0, %c0_i32, %c0_i32_0 : i32, i32, i32
  }
  func.func @transform_6(%arg0: i32) -> (i32, i32, i32) {
    %c0_i32 = arith.constant 0 : i32
    %c0_i32_0 = arith.constant 0 : i32
    %c0_i32_1 = arith.constant 0 : i32
    return %arg0, %c0_i32, %c0_i32_0 : i32, i32, i32
  }
  func.func @transform_7(%arg0: i32) -> (i32, i32, i32) {
    %c0_i32 = arith.constant 0 : i32
    %c0_i32_0 = arith.constant 0 : i32
    %c0_i32_1 = arith.constant 0 : i32
    return %arg0, %c0_i32, %c0_i32_0 : i32, i32, i32
  }
  func.func @transform_8(%arg0: i32) -> (i32, i32, i32) {
    %c0_i32 = arith.constant 0 : i32
    %c0_i32_0 = arith.constant 0 : i32
    %c0_i32_1 = arith.constant 0 : i32
    return %arg0, %c0_i32, %c0_i32_0 : i32, i32, i32
  }
  func.func @transform_9(%arg0: i32) -> (i32, i32, i32) {
    %c0_i32 = arith.constant 0 : i32
    %c0_i32_0 = arith.constant 0 : i32
    %c0_i32_1 = arith.constant 0 : i32
    return %arg0, %c0_i32, %c0_i32_0 : i32, i32, i32
  }
}

</mosaic_0001>

<bundles_post_ra>
// kernel: resnet_block_adain.1
= control target key start
LH: loop header
LB: loop body
LE: loop exit
PB: predicated region body
PF: predicated region fallthrough
CT: control target
= control target key end

     0   :  { %s6048_s30 = smov 0   ;;  %s6975_s0 = inlined_call_operand.vmem [shape: f32[2,4,256], index: 0, kind: input, shape index: {}]   ;;  %s6976_s1 = inlined_call_operand.vmem [shape: f32[3,3,4,4], index: 1, kind: input, shape index: {}]   ;;  %s6977_s2 = inlined_call_operand.vmem [shape: f32[4,1], index: 2, kind: input, shape index: {}]   ;;  %s6978_s3 = inlined_call_operand.vmem [shape: f32[3,3,4,4], index: 3, kind: input, shape index: {}]   ;;  %s6979_s4 = inlined_call_operand.vmem [shape: f32[4,1], index: 4, kind: input, shape index: {}]   ;;  %s6980_s5 = inlined_call_operand.vmem [shape: f32[2,4,1], index: 5, kind: input, shape index: {}]   ;;  %s6981_s6 = inlined_call_operand.vmem [shape: f32[2,4,1], index: 6, kind: input, shape index: {}]   ;;  %s6982_s7 = inlined_call_operand.vmem [shape: f32[2,4,1], index: 7, kind: input, shape index: {}]   ;;  %s6983_s8 = inlined_call_operand.vmem [shape: f32[2,4,1], index: 8, kind: input, shape index: {}]   ;;  %s6984_s9 = inlined_call_operand.vmem [shape: f32[2,4,256], index: 9, kind: output, shape index: {}]  }
   0x1 LB: > { %s5569_s10 = sadd.s32 4294967295, %s5950_s30   ;;  %p5573_p0 = scmp.ge.s32.totalorder %s5950_s30, 1  ;;  %s5950_s30 = sphi %s6048_s30, %s19_s30  }
   0x2   : > { %p323_p1 = scmp.lt.s32.totalorder %s5950_s30, 3 }
   0x4   : > { %p324_p2 = pnand %p5573_p0, %p323_p1 }
   0x5   : > { %p375_p3 = scmp.lt.s32.totalorder (!%p324_p2), %s5569_s10, 1  ;;  %s5952_s15 = smov (!%p324_p2), 112   ;;  %vm411_vm0 = vcmask (!%p324_p2), 130048   ;;  %v5959_v7 = vmov (!%p324_p2), 0.0   ;;  %v5960_v12 = vmov (!%p324_p2), 1983009808   ;;  %v471_v14 = vlaneseq (!%p324_p2) }
   0x6   : > { %327 = sbr.rel (%p324_p2) target bundleno = 3244 (0xcac), region = 56  ;;  %s5953_s16 = smov (!%p324_p2), 16   ;;  %5728 = vmatprep.subr.mxu1 (!%p324_p2), %v5959_v7  ;;  %1142 = vmatprep.mubr.f32.mxu0 (!%p324_p2), %v5959_v7  ;;  %v469_v13 = vunpack.c.l.s4 (!%p324_p2), %v5960_v12  ;;  %v5961_v20 = vmov (!%p324_p2), 1934713408   ;;  %vm756_vm1 = vcmask (!%p324_p2), 7168   ;;  %vm769_vm2 = vcmask (!%p324_p2), 138240  }
   0x7   : > { %s5954_s17 = smov (!%p324_p2), 48   ;;  %s5955_s18 = smov (!%p324_p2), 96   ;;  %v472_v18 = vshrl.u32 (!%p324_p2), %v471_v14, 7  ;;  %v502_v21 = vunpack.c.l.s4 (!%p324_p2), %v5961_v20  ;;  %vm1026_vm3 = vcmask (!%p324_p2), 277504   ;;  %vm6995_vm4 = vcmask (!%p324_p2), 146432  }
   0x8   : > { %s7042_s19 = smov (!%p324_p2), 80   ;;  %s5957_s20 = smov (!%p324_p2), 64   ;;  %v470_v17 = vunpack.c.0.s8 (!%p324_p2), %v469_v13  ;;  %vm6997_vm5 = vcmask (!%p324_p2), 424960   ;;  %vm6993_vm6 = vcmask (!%p324_p2), 293888   ;;  %vm6994_vm7 = vcmask (!%p324_p2), 572416  }
   0x9   : > { %s5958_s21 = smov (!%p324_p2), 32   ;;  %v503_v28 = vunpack.c.0.s8 (!%p324_p2), %v502_v21  ;;  %s5962_s22 = smov (!%p324_p2), 127   ;;  %vm6996_vm8 = vcmask (!%p324_p2), 441344   ;;  %vm7034_vm9 = vmmov (!%p324_p2), 0   ;;  %vm1032_vm10 = vcmask (!%p324_p2), 719872  }
   0xa   : > { %v6100_v24 = vsub.s32 (!%p324_p2), %v470_v17, %v472_v18  ;;  %s5963_s23 = smov (!%p324_p2), 1   ;;  %s7029_s24 = smov (!%p324_p2), 3   ;;  %5730 = vmatprep.mubr.msk.f32.mxu1 (!%p324_p2), %vm7034_vm9, %v5959_v7  ;;  %vm7009_vm11 = vcmask (!%p324_p2), 588800   ;;  %vm1038_vm12 = vcmask (!%p324_p2), 113664   ;;  %vm7004_vm13 = vcmask (!%p324_p2), 867328  }
   0xb   : > { %v6106_v35 = vsub.s32 (!%p324_p2), %v503_v28, %v472_v18  ;;  %s6987_s25 = smov (!%p324_p2), 36   ;;  %s6986_s26 = smov (!%p324_p2), 72   ;;  %vm7003_vm14 = vcmask (!%p324_p2), 1014784   ;;  %vm1019_vm15 = vcmask (!%p324_p2), 736256  }
   0xc   : > { %s6992_s27 = smov (!%p324_p2), 52   ;;  %s6989_s28 = smov (!%p324_p2), 88  }
   0xd   : > { %s7124_s10 = smov (!%p375_p3, %s5569_s10), 1  ;;  %s7000_s29 = smov 126  }
   0xe   : > { %s6985_s11 = sshll.u32 %s7124_s10, 3  ;;  %s7016_s12 = smov 90  }
   0xf   : > { %s6064_s14 = scalar_lea.vmem %s6975_s0, %s6985_s11  ;;  %s6988_s13 = smov 18  }
  0x10   : > { %v401_v0 = vld [vmem:[%s6064_s14] sm:$0xff]  ;;  %s6990_s11 = smov 34  }
  0x11   : > { %403 = vrot.lane.b32.xlu0 %v401_v0, %s5952_s15  ;;  %v406_v1 = vcombine.high %v401_v0, %v401_v0 }
  0x13   : > { %409 = vrot.lane.b32.xlu1 %v406_v1, %s5953_s16 }
  0x15   : > { %407 = vrot.lane.b32.xlu0 %v401_v0, %s5953_s16 }
  0x17   : > { %416 = vrot.lane.b32.xlu1 %v406_v1, %s5954_s17 }
  0x83   : > { %v404_v2 = vpop.permute.xlu0 %403 }
  0x85   : > { %v410_v5 = vpop.permute.xlu1 %409 }
  0x87   : > { %v408_v3 = vpop.permute.xlu0 %407 }
  0x88   : > { %v419_v4 = vsel %vm411_vm0, %v404_v2, %v408_v3  ;;  %v6079_v6 = vsel %vm411_vm0, %v408_v3, %v410_v5 }
  0x89   : > { %422 = vrot.lane.b32.xlu0 %v419_v4, %s5952_s15  ;;  %425 = vrot.lane.b32.xlu1 %v419_v4, %s5955_s18  ;;  %v417_v8 = vpop.permute.xlu1 %416 }
  0x8a   : > { %v420_v9 = vsel %vm411_vm0, %v410_v5, %v417_v8 }
  0x8b   : > { %v609_v50 = vrot.slane %v420_v9, %v6100_v24 }
  0x8d   : > { %428 = vrot.lane.b32.xlu0 %v419_v4, %s7042_s19  ;;  %431 = vrot.lane.b32.xlu1 %v419_v4, %s5957_s20 }
  0x91   : > { %434 = vrot.lane.b32.xlu0 %v419_v4, %s5954_s17  ;;  %437 = vrot.lane.b32.xlu1 %v419_v4, %s5958_s21 }
  0x95   : > { %440 = vrot.lane.b32.xlu0 %v419_v4, %s5953_s16  ;;  %443 = vrot.lane.b32.xlu1 %v6079_v6, %s5952_s15 }
  0x99   : > { %446 = vrot.lane.b32.xlu0 %v6079_v6, %s5955_s18  ;;  %449 = vrot.lane.b32.xlu1 %v6079_v6, %s7042_s19 }
  0x9d   : > { %452 = vrot.lane.b32.xlu0 %v6079_v6, %s5957_s20  ;;  %455 = vrot.lane.b32.xlu1 %v6079_v6, %s5954_s17 }
  0xa1   : > { %458 = vrot.lane.b32.xlu0 %v6079_v6, %s5958_s21  ;;  %461 = vrot.lane.b32.xlu1 %v6079_v6, %s5953_s16 }
  0xa5   : > { %465 = vrot.lane.b32.xlu0 %v420_v9, %s5952_s15 }
  0xfb   : > { %v423_v10 = vpop.permute.xlu0 %422  ;;  %v426_v11 = vpop.permute.xlu1 %425 }
  0xfc   : > { %v467_v25 = vcombine.low %v419_v4, %v426_v11 }
  0xfe   : > { %v474_v30 = vrot.slane %v467_v25, %v6100_v24 }
  0xff   : > { %v429_v15 = vpop.permute.xlu0 %428  ;;  %v432_v16 = vpop.permute.xlu1 %431 }
 0x100   : > { %v475_v19 = vcombine.low %v423_v10, %v429_v15 }
 0x102   : > { %v482_v26 = vrot.slane %v475_v19, %v6100_v24 }
 0x103   : > { %v435_v22 = vpop.permute.xlu0 %434  ;;  %v438_v23 = vpop.permute.xlu1 %437 }
 0x104   : > { %v483_v27 = vcombine.low %v432_v16, %v438_v23  ;;  %v499_v32 = vcombine.low %v474_v30, %v482_v26  ;;  %v500_v39 = vcombine.high %v474_v30, %v482_v26 }
 0x106   : > { %v490_v33 = vrot.slane %v483_v27, %v6100_v24  ;;  %v507_v40 = vrot.slane %v499_v32, %v6106_v35  ;;  %v514_v45 = vrot.slane %v500_v39, %v6106_v35 }
 0x107   : > { %v441_v29 = vpop.permute.xlu0 %440  ;;  %v444_v48 = vpop.permute.xlu1 %443 }
 0x108   : > { %v491_v31 = vcombine.low %v435_v22, %v441_v29 }
 0x10a   : > { %v498_v34 = vrot.slane %v491_v31, %v6100_v24 }
 0x10b   : > { %v447_v36 = vpop.permute.xlu0 %446  ;;  %v450_v55 = vpop.permute.xlu1 %449 }
 0x10c   : > { %v515_v37 = vcombine.low %v490_v33, %v498_v34  ;;  %v516_v38 = vcombine.high %v490_v33, %v498_v34  ;;  %v535_v63 = vcombine.low %v6079_v6, %v447_v36  ;;  %v543_v0 = vcombine.low %v444_v48, %v450_v55 }
 0x10e   : > { %v523_v41 = vrot.slane %v515_v37, %v6106_v35  ;;  %v530_v44 = vrot.slane %v516_v38, %v6106_v35  ;;  %v542_v4 = vrot.slane %v535_v63, %v6100_v24  ;;  %v550_v5 = vrot.slane %v543_v0, %v6100_v24 }
 0x10f   : > { %v453_v42 = vpop.permute.xlu0 %452  ;;  %v456_v57 = vpop.permute.xlu1 %455 }
 0x110   : > { %v532_v43 = vcombine.high %v507_v40, %v523_v41  ;;  %v534_v47 = vcombine.high %v514_v45, %v530_v44  ;;  %v531_v3 = vcombine.low %v507_v40, %v523_v41  ;;  %v533_v6 = vcombine.low %v514_v45, %v530_v44 }
 0x111   : > { %v567_v9 = vcombine.low %v542_v4, %v550_v5  ;;  %v568_v12 = vcombine.high %v542_v4, %v550_v5 }
 0x112   : > { %654 = vrot.lane.b32.xlu0 %v532_v43, %s5962_s22 }
 0x113   : > { %v459_v46 = vpop.permute.xlu0 %458  ;;  %v462_v59 = vpop.permute.xlu1 %461  ;;  %v575_v13 = vrot.slane %v567_v9, %v6106_v35  ;;  %v582_v16 = vrot.slane %v568_v12, %v6106_v35 }
 0x114   : > { %v551_v60 = vcombine.low %v453_v42, %v459_v46  ;;  %v559_v61 = vcombine.low %v456_v57, %v462_v59 }
 0x116   : > { %666 = vrot.lane.b32.xlu0 %v534_v47, %s5962_s22  ;;  %v558_v1 = vrot.slane %v551_v60, %v6100_v24  ;;  %v566_v2 = vrot.slane %v559_v61, %v6100_v24 }
 0x117   : > { %v466_v49 = vpop.permute.xlu0 %465 }
 0x118   : > { %v617_v51 = vrot.slane %v466_v49, %v6100_v24  ;;  %v583_v8 = vcombine.low %v558_v1, %v566_v2  ;;  %v584_v10 = vcombine.high %v558_v1, %v566_v2 }
 0x11a   : > { %v618_v52 = vcombine.low %v609_v50, %v617_v51  ;;  %690 = vrot.lane.b32.xlu0 %v532_v43, %s5963_s23  ;;  %v619_v53 = vcombine.high %v609_v50, %v617_v51  ;;  %v591_v11 = vrot.slane %v583_v8, %v6106_v35  ;;  %v598_v15 = vrot.slane %v584_v10, %v6106_v35 }
 0x11c   : > { %v626_v54 = vrot.slane %v618_v52, %v6106_v35  ;;  %v633_v56 = vrot.slane %v619_v53, %v6106_v35  ;;  %v600_v14 = vcombine.high %v575_v13, %v591_v11  ;;  %v602_v17 = vcombine.high %v582_v16, %v598_v15 }
 0x11d   : > { %v599_v18 = vcombine.low %v575_v13, %v591_v11  ;;  %v601_v19 = vcombine.low %v582_v16, %v598_v15 }
 0x11e   : > { %652 = vrot.lane.b32.xlu1 %v626_v54, %s5962_s22  ;;  %702 = vrot.lane.b32.xlu0 %v534_v47, %s5963_s23  ;;  %v634_v58 = vcombine.high %v626_v54, %v5959_v7  ;;  %v635_v62 = vcombine.high %v633_v56, %v5959_v7 }
 0x122   : > { %664 = vrot.lane.b32.xlu1 %v633_v56, %s5962_s22  ;;  %726 = vrot.lane.b32.xlu0 %v532_v43, %s7029_s24 }
 0x126   : > { %688 = vrot.lane.b32.xlu1 %v626_v54, %s5963_s23  ;;  %738 = vrot.lane.b32.xlu0 %v534_v47, %s7029_s24 }
 0x12a   : > { %700 = vrot.lane.b32.xlu1 %v633_v56, %s5963_s23  ;;  %658 = vrot.lane.b32.xlu0 %v634_v58, %s5962_s22 }
 0x12e   : > { %724 = vrot.lane.b32.xlu1 %v626_v54, %s7029_s24  ;;  %670 = vrot.lane.b32.xlu0 %v635_v62, %s5962_s22 }
 0x132   : > { %694 = vrot.lane.b32.xlu0 %v634_v58, %s5963_s23  ;;  %648 = vrot.lane.b32.xlu1 %v531_v3, %s5962_s22 }
 0x136   : > { %706 = vrot.lane.b32.xlu0 %v635_v62, %s5963_s23  ;;  %660 = vrot.lane.b32.xlu1 %v533_v6, %s5962_s22 }
 0x13a   : > { %730 = vrot.lane.b32.xlu0 %v634_v58, %s7029_s24  ;;  %684 = vrot.lane.b32.xlu1 %v531_v3, %s5963_s23 }
 0x13e   : > { %696 = vrot.lane.b32.xlu1 %v533_v6, %s5963_s23  ;;  %656 = vrot.lane.b32.xlu0 %v600_v14, %s5962_s22 }
 0x142   : > { %720 = vrot.lane.b32.xlu1 %v531_v3, %s7029_s24  ;;  %668 = vrot.lane.b32.xlu0 %v602_v17, %s5962_s22 }
 0x146   : > { %732 = vrot.lane.b32.xlu1 %v533_v6, %s7029_s24  ;;  %692 = vrot.lane.b32.xlu0 %v600_v14, %s5963_s23 }
 0x14a   : > { %704 = vrot.lane.b32.xlu0 %v602_v17, %s5963_s23  ;;  %650 = vrot.lane.b32.xlu1 %v599_v18, %s5962_s22 }
 0x14e   : > { %728 = vrot.lane.b32.xlu0 %v600_v14, %s7029_s24  ;;  %662 = vrot.lane.b32.xlu1 %v601_v19, %s5962_s22 }
 0x152   : > { %740 = vrot.lane.b32.xlu0 %v602_v17, %s7029_s24  ;;  %686 = vrot.lane.b32.xlu1 %v599_v18, %s5963_s23 }
 0x156   : > { %742 = vrot.lane.b32.xlu0 %v635_v62, %s7029_s24  ;;  %698 = vrot.lane.b32.xlu1 %v601_v19, %s5963_s23 }
 0x15a   : > { %722 = vrot.lane.b32.xlu1 %v599_v18, %s7029_s24 }
 0x15e   : > { %734 = vrot.lane.b32.xlu1 %v601_v19, %s7029_s24 }
 0x162   : > { %736 = vrot.lane.b32.xlu1 %v633_v56, %s7029_s24  ;;  %s7039_s24 = smov 114  }
 0x184   : > { %v655_v20 = vpop.permute.xlu0 %654 }
 0x188   : > { %v667_v21 = vpop.permute.xlu0 %666 }
 0x18c   : > { %v691_v22 = vpop.permute.xlu0 %690 }
 0x18d   : > { %v760_v47 = vsel %vm756_vm1, %v655_v20, %v691_v22 }
 0x190   : > { %v703_v23 = vpop.permute.xlu0 %702  ;;  %v6163_v25 = vpop.permute.xlu1 %652 }
 0x191   : > { %v766_v43 = vsel %vm756_vm1, %v667_v21, %v703_v23 }
 0x194   : > { %v727_v26 = vpop.permute.xlu0 %726  ;;  %v6165_v27 = vpop.permute.xlu1 %664 }
 0x195   : > { %v773_v48 = vsel %vm769_vm2, %v760_v47, %v727_v26 }
 0x198   : > { %v739_v28 = vpop.permute.xlu0 %738  ;;  %v6167_v29 = vpop.permute.xlu1 %688 }
 0x199   : > { %v779_v46 = vsel %vm769_vm2, %v766_v43, %v739_v28 }
 0x19a   : > { %v798_v49 = vcombine.low %v773_v48, %v779_v46  ;;  %v799_v56 = vcombine.high %v773_v48, %v779_v46 }
 0x19c   : > { %v659_v30 = vpop.permute.xlu0 %658  ;;  %v6169_v31 = vpop.permute.xlu1 %700  ;;  %v6182_v59 = vrot.slane %v798_v49, %v6100_v24  ;;  %v813_v0 = vrot.slane %v799_v56, %v6100_v24 }
 0x1a0   : > { %v671_v32 = vpop.permute.xlu0 %670  ;;  %v6171_v33 = vpop.permute.xlu1 %724 }
 0x1a4   : > { %v695_v34 = vpop.permute.xlu0 %694  ;;  %v649_v36 = vpop.permute.xlu1 %648 }
 0x1a5   : > { %v762_v23 = vsel %vm756_vm1, %v659_v30, %v695_v34 }
 0x1a8   : > { %v707_v37 = vpop.permute.xlu0 %706  ;;  %v661_v38 = vpop.permute.xlu1 %660 }
 0x1a9   : > { %v768_v16 = vsel %vm756_vm1, %v671_v32, %v707_v37  ;;  %v759_v32 = vsel %vm756_vm1, %v6163_v25, %v6167_v29 }
 0x1aa   : > { %v772_v43 = vsel %vm769_vm2, %v759_v32, %v6171_v33 }
 0x1ac   : > { %v731_v39 = vpop.permute.xlu0 %730  ;;  %v685_v40 = vpop.permute.xlu1 %684 }
 0x1ad   : > { %v757_v50 = vsel %vm756_vm1, %v649_v36, %v685_v40  ;;  %v775_v36 = vsel %vm769_vm2, %v762_v23, %v731_v39  ;;  %v765_v40 = vsel %vm756_vm1, %v6165_v27, %v6169_v31 }
 0x1b0   : > { %v657_v41 = vpop.permute.xlu0 %656  ;;  %v697_v42 = vpop.permute.xlu1 %696 }
 0x1b1   : > { %v763_v51 = vsel %vm756_vm1, %v661_v38, %v697_v42 }
 0x1b4   : > { %v669_v44 = vpop.permute.xlu0 %668  ;;  %v721_v45 = vpop.permute.xlu1 %720 }
 0x1b5   : > { %v770_v54 = vsel %vm769_vm2, %v757_v50, %v721_v45 }
 0x1b8   : > { %v693_v52 = vpop.permute.xlu0 %692  ;;  %v733_v53 = vpop.permute.xlu1 %732 }
 0x1b9   : > { %v776_v55 = vsel %vm769_vm2, %v763_v51, %v733_v53  ;;  %v761_v15 = vsel %vm756_vm1, %v657_v41, %v693_v52 }
 0x1ba   : > { %v782_v57 = vcombine.low %v770_v54, %v776_v55  ;;  %v783_v58 = vcombine.high %v770_v54, %v776_v55 }
 0x1bc   : > { %v6185_v60 = vrot.slane %v782_v57, %v6100_v24  ;;  %v797_v61 = vrot.slane %v783_v58, %v6100_v24  ;;  %v705_v62 = vpop.permute.xlu0 %704  ;;  %v651_v63 = vpop.permute.xlu1 %650 }
 0x1bd   : > { %v767_v11 = vsel %vm756_vm1, %v669_v44, %v705_v62 }
 0x1be   : > { %v815_v1 = vcombine.high %v6185_v60, %v6182_v59  ;;  %v830_v4 = vcombine.low %v797_v61, %v813_v0  ;;  %v831_v25 = vcombine.high %v797_v61, %v813_v0  ;;  %v814_v50 = vcombine.low %v6185_v60, %v6182_v59 }
 0x1c0   : > { %v663_v2 = vpop.permute.xlu1 %662  ;;  %v6192_v3 = vrot.slane %v815_v1, %v6106_v35  ;;  %v729_v5 = vpop.permute.xlu0 %728  ;;  %v838_v6 = vrot.slane %v830_v4, %v6106_v35  ;;  %v845_v54 = vrot.slane %v831_v25, %v6106_v35  ;;  %v822_v57 = vrot.slane %v814_v50, %v6106_v35 }
 0x1c1   : > { %v774_v17 = vsel %vm769_vm2, %v761_v15, %v729_v5 }
 0x1c2   : > { %948 = vrot.lane.b32.xlu1 %v6192_v3, %s6987_s25  ;;  %v849_v56 = vcombine.high %v845_v54, %v5959_v7  ;;  %v848_v58 = vcombine.high %v838_v6, %v5959_v7  ;;  %v846_v59 = vcombine.high %v822_v57, %v5959_v7  ;;  %v847_v61 = vcombine.high %v6192_v3, %v5959_v7  ;;  %s7018_s25 = smov 70  }
 0x1c4   : > { %v687_v8 = vpop.permute.xlu1 %686  ;;  %v741_v9 = vpop.permute.xlu0 %740 }
 0x1c5   : > { %v780_v13 = vsel %vm769_vm2, %v767_v11, %v741_v9  ;;  %v758_v19 = vsel %vm756_vm1, %v651_v63, %v687_v8 }
 0x1c6   : > { %956 = vrot.lane.b32.xlu1 %v838_v6, %s6986_s26  ;;  %v866_v18 = vcombine.low %v774_v17, %v780_v13  ;;  %v867_v44 = vcombine.high %v774_v17, %v780_v13  ;;  %s6991_s26 = smov 54  }
 0x1c8   : > { %v699_v10 = vpop.permute.xlu1 %698  ;;  %v743_v14 = vpop.permute.xlu0 %742  ;;  %v874_v41 = vrot.slane %v866_v18, %v6100_v24  ;;  %v881_v49 = vrot.slane %v867_v44, %v6100_v24 }
 0x1c9   : > { %v781_v20 = vsel %vm769_vm2, %v768_v16, %v743_v14  ;;  %v764_v21 = vsel %vm756_vm1, %v663_v2, %v699_v10 }
 0x1ca   : > { %v926_v37 = vcombine.low %v775_v36, %v781_v20 }
 0x1cc   : > { %v723_v12 = vpop.permute.xlu1 %722  ;;  %v933_v29 = vrot.slane %v926_v37, %v6100_v24 }
 0x1cd   : > { %v771_v26 = vsel %vm769_vm2, %v758_v19, %v723_v12 }
 0x1d0   : > { %v735_v22 = vpop.permute.xlu1 %734 }
 0x1d1   : > { %v777_v28 = vsel %vm769_vm2, %v764_v21, %v735_v22 }
 0x1d2   : > { %v850_v38 = vcombine.low %v771_v26, %v777_v28  ;;  %v851_v42 = vcombine.high %v771_v26, %v777_v28 }
 0x1d4   : > { %v858_v30 = vrot.slane %v850_v38, %v6100_v24  ;;  %v737_v34 = vpop.permute.xlu1 %736  ;;  %v865_v47 = vrot.slane %v851_v42, %v6100_v24 }
 0x1d5   : > { %v778_v39 = vsel %vm769_vm2, %v765_v40, %v737_v34 }
 0x1d6   : > { %v918_v45 = vcombine.low %v772_v43, %v778_v39  ;;  %v882_v46 = vcombine.low %v858_v30, %v874_v41  ;;  %v883_v48 = vcombine.high %v858_v30, %v874_v41  ;;  %v898_v53 = vcombine.low %v865_v47, %v881_v49 }
 0x1d7   : > { %v899_v62 = vcombine.high %v865_v47, %v881_v49 }
 0x1d8   : > { %v925_v27 = vrot.slane %v918_v45, %v6100_v24  ;;  %v890_v31 = vrot.slane %v882_v46, %v6106_v35  ;;  %v897_v51 = vrot.slane %v883_v48, %v6106_v35  ;;  %v906_v55 = vrot.slane %v898_v53, %v6106_v35 }
 0x1d9   : > { %v913_v0 = vrot.slane %v899_v62, %v6106_v35 }
 0x1da   : > { %972 = vrot.lane.b32.xlu0 %v890_v31, %s5953_s16  ;;  %v934_v33 = vcombine.low %v925_v27, %v933_v29  ;;  %v914_v60 = vcombine.high %v890_v31, %v5959_v7  ;;  %v915_v63 = vcombine.high %v897_v51, %v5959_v7  ;;  %v916_v2 = vcombine.high %v906_v55, %v5959_v7  ;;  %v1047_v29 = vld [vmem:[%s6976_s1 + $0x4] sm:$0xf] }
 0x1db   : > { %v917_v1 = vcombine.high %v913_v0, %v5959_v7 }
 0x1dc   : > { %v941_v52 = vrot.slane %v934_v33, %v6106_v35 }
 0x1de   : > { %980 = vrot.lane.b32.xlu0 %v897_v51, %s6992_s27  ;;  %1004 = vrot.lane.b32.xlu1 %v941_v52, %s5958_s21  ;;  %v942_v3 = vcombine.high %v941_v52, %v5959_v7  ;;  %s6999_s27 = smov 50   ;;  %v1046_v51 = vld [vmem:[%s6976_s1] sm:$0xf] }
 0x1e2   : > { %988 = vrot.lane.b32.xlu0 %v906_v55, %s6989_s28  ;;  %968 = vrot.lane.b32.xlu1 %v849_v56, %s7000_s29  ;;  %s7002_s28 = smov 14  }
 0x1e6   : > { %960 = vrot.lane.b32.xlu0 %v848_v58, %s7016_s12  ;;  %944 = vrot.lane.b32.xlu1 %v846_v59, %s6988_s13  ;;  %s7019_s13 = smov 124   ;;  %v1048_v58 = vld [vmem:[%s6976_s1 + $0x8] sm:$0xf] }
 0x1ea   : > { %976 = vrot.lane.b32.xlu0 %v914_v60, %s6990_s11  ;;  %952 = vrot.lane.b32.xlu1 %v847_v61, %s6991_s26  ;;  %s6998_s11 = smov 106   ;;  %s7007_s26 = smov 108  }
 0x1ee   : > { %984 = vrot.lane.b32.xlu0 %v915_v63, %s7018_s25  ;;  %996 = vrot.lane.b32.xlu1 %v913_v0, %s7019_s13  ;;  %s7026_s25 = smov 38   ;;  %s7027_s13 = smov 20  }
 0x1f2   : > { %1000 = vrot.lane.b32.xlu0 %v917_v1, %s7002_s28  ;;  %992 = vrot.lane.b32.xlu1 %v916_v2, %s6998_s11  ;;  %s7022_s11 = smov 110   ;;  %s7014_s28 = smov 91   ;;  %v1049_v1 = vld [vmem:[%s6976_s1 + $0xc] sm:$0xf] }
 0x1f6   : > { %964 = vrot.lane.b32.xlu1 %v845_v54, %s7007_s26  ;;  %1008 = vrot.lane.b32.xlu0 %v942_v3, %s6999_s27  ;;  %s7005_s27 = smov 109  }
 0x234   : > { %v949_v4 = vpop.permute.xlu1 %948 }
 0x238   : > { %v957_v5 = vpop.permute.xlu1 %956 }
 0x24c   : > { %v973_v8 = vpop.permute.xlu0 %972 }
 0x250   : > { %v981_v6 = vpop.permute.xlu0 %980  ;;  %v1005_v9 = vpop.permute.xlu1 %1004 }
 0x254   : > { %v989_v10 = vpop.permute.xlu0 %988  ;;  %v969_v11 = vpop.permute.xlu1 %968 }
 0x255   : > { %v1025_v14 = vsel %vm411_vm0, %v969_v11, %v973_v8 }
 0x258   : > { %v961_v12 = vpop.permute.xlu0 %960  ;;  %v945_v13 = vpop.permute.xlu1 %944 }
 0x259   : > { %v1012_v18 = vsel %vm6995_vm4, %v822_v57, %v945_v13  ;;  %vm7037_vm4 = vcmask 883712  }
 0x25a   : > { %v1014_v22 = vsel %vm6993_vm6, %v1012_v18, %v949_v4  ;;  %vm1040_vm6 = vcmask 261120  }
 0x25c   : > { %v977_v15 = vpop.permute.xlu0 %976  ;;  %v953_v16 = vpop.permute.xlu1 %952 }
 0x25d   : > { %v1027_v17 = vsel %vm1026_vm3, %v1025_v14, %v977_v15  ;;  %v1016_v26 = vsel %vm6996_vm8, %v1014_v22, %v953_v16  ;;  %vm1044_vm8 = vcmask 556032   ;;  %v1051_v14 = vld [vmem:[%s6976_s1 + $0x14] sm:$0xf] }
 0x25e   : > { %v1029_v20 = vsel %vm6997_vm5, %v1027_v17, %v981_v6  ;;  %v1018_v32 = vsel %vm7009_vm11, %v1016_v26, %v957_v5  ;;  %vm7011_vm5 = vcmask 1031168   ;;  %vm7036_vm11 = vcmask 31744   ;;  %v1050_v6 = vld [vmem:[%s6976_s1 + $0x10] sm:$0xf]  ;;  %v1053_v26 = vld [vmem:[%s6976_s1 + $0x1c] sm:$0xf] }
 0x25f   : > { %v1020_v34 = vsel %vm1019_vm15, %v1018_v32, %v961_v12 }
 0x260   : > { %v985_v19 = vpop.permute.xlu0 %984  ;;  %v997_v21 = vpop.permute.xlu1 %996 }
 0x261   : > { %v1031_v23 = vsel %vm6994_vm7, %v1029_v20, %v985_v19  ;;  %vm1042_vm7 = vcmask 408576   ;;  %v1052_v19 = vld [vmem:[%s6976_s1 + $0x18] sm:$0xf] }
 0x262   : > { %v1033_v36 = vsel %vm1032_vm10, %v1031_v23, %v989_v10 }
 0x264   : > { %v1001_v28 = vpop.permute.xlu0 %1000  ;;  %v993_v38 = vpop.permute.xlu1 %992 }
 0x265   : > { %v1039_v37 = vsel %vm1038_vm12, %v997_v21, %v1001_v28  ;;  %v1035_v40 = vsel %vm7004_vm13, %v1033_v36, %v993_v38  ;;  %vm7010_vm13 = vcmask 1039360   ;;  %v1054_v38 = vld [vmem:[%s6976_s1 + $0x20] sm:$0xf] }
 0x266   : > { %v1037_v41 = vsel %vm7003_vm14, %v1035_v40, %v997_v21  ;;  %v1041_v30 = vsel %vm1040_vm6, %v1039_v37, %v1005_v9  ;;  %vm1071_vm14 = vcmask 1043456  }
 0x267   : > { %1060 = vrot.lane.b32.xlu0 %v1037_v41, %s5962_s22 }
 0x268   : > { %v1009_v42 = vpop.permute.xlu0 %1008  ;;  %v965_v43 = vpop.permute.xlu1 %964 }
 0x269   : > { %v1043_v39 = vsel %vm1042_vm7, %v1041_v30, %v1009_v42  ;;  %v1022_v44 = vsel %vm7037_vm4, %v1020_v34, %v965_v43  ;;  %v5988_v42 = vmov 0   ;;  %v2902_v30 = vld [vmem:[%s6977_s2] sm:$0xf] }
 0x26a   : > { %v1045_v45 = vsel %vm1044_vm8, %v1043_v39, 0.0  ;;  %v1024_v46 = vsel %vm7011_vm5, %v1022_v44, %v969_v11  ;;  %5936 = vset.pattern.permute.xlu1 %v5988_v42  ;;  %5937 = vset.pattern.permute.xlu0 %v5988_v42 }
 0x26b   : > { %1062 = vrot.lane.b32.xlu1 %v1045_v45, %s5962_s22  ;;  %1058 = vrot.lane.b32.xlu0 %v1024_v46, %s5962_s22 }
 0x26f   : > { %1371 = vrot.lane.b32.xlu1 %v1037_v41, %s7000_s29  ;;  %1373 = vrot.lane.b32.xlu0 %v1045_v45, %s7000_s29 }
 0x273   : > { %1369 = vrot.lane.b32.xlu1 %v1024_v46, %s7000_s29  ;;  %1532 = vrot.lane.b32.xlu0 %v1037_v41, %s7022_s11  ;;  %s7020_s29 = smov 92  }
 0x277   : > { %1534 = vrot.lane.b32.xlu1 %v1045_v45, %s7022_s11  ;;  %1530 = vrot.lane.b32.xlu0 %v1024_v46, %s7022_s11 }
 0x27b   : > { %1694 = vrot.lane.b32.xlu1 %v1037_v41, %s7005_s27  ;;  %1696 = vrot.lane.b32.xlu0 %v1045_v45, %s7005_s27 }
 0x27f   : > { %1692 = vrot.lane.b32.xlu1 %v1024_v46, %s7005_s27  ;;  %1856 = vrot.lane.b32.xlu0 %v1037_v41, %s7007_s26  ;;  %s7024_s27 = smov 74  }
 0x283   : > { %1858 = vrot.lane.b32.xlu1 %v1045_v45, %s7007_s26  ;;  %1854 = vrot.lane.b32.xlu0 %v1024_v46, %s7007_s26  ;;  %s5986_s26 = smov 2  }
 0x287   : > { %2017 = vrot.lane.b32.xlu1 %v1037_v41, %s7020_s29  ;;  %2019 = vrot.lane.b32.xlu0 %v1045_v45, %s7020_s29 }
 0x28b   : > { %2015 = vrot.lane.b32.xlu1 %v1024_v46, %s7020_s29  ;;  %2179 = vrot.lane.b32.xlu0 %v1037_v41, %s7014_s28 }
 0x28f   : > { %2181 = vrot.lane.b32.xlu1 %v1045_v45, %s7014_s28  ;;  %2177 = vrot.lane.b32.xlu0 %v1024_v46, %s7014_s28  ;;  %s5985_s28 = smov 4  }
 0x293   : > { %2341 = vrot.lane.b32.xlu1 %v1037_v41, %s7016_s12  ;;  %2343 = vrot.lane.b32.xlu0 %v1045_v45, %s7016_s12 }
 0x297   : > { %2339 = vrot.lane.b32.xlu1 %v1024_v46, %s7016_s12  ;;  %s7025_s12 = smov 56  }
 0x2d9   : > { %v1061_v25 = vpop.permute.xlu0 %1060 }
 0x2dd   : > { %v1059_v47 = vpop.permute.xlu0 %1058  ;;  %v1063_v27 = vpop.permute.xlu1 %1062 }
 0x2de   : > { %5729 = vmatpush3.msk.msra.mxu1 %vm1071_vm14, %v1063_v27  ;;  %v1066_v31 = vsel %vm7010_vm13, %v1061_v25, %v1063_v27  ;;  %v1065_v48 = vsel %vm7010_vm13, %v1059_v47, %v1061_v25  ;;  %vm7012_vm13 = vcmask 900096  }
 0x2df   : > { %5582 = vmatprep.subr.msk.mxu0 %vm1071_vm14, %v1066_v31  ;;  %5731 = vmatmul.mubr.msk.f32.vlgmr.msra.gmra.mrb[0].mxu1 %vm7036_vm11, %v1047_v29 }
 0x2e0   : > { %5733 = vmatprep.subr.mxu1 %v5959_v7  ;;  %5583 = vmatpush1.msk.msra.mxu0 %vm1071_vm14, %v1065_v48 }
 0x2e1   : > { %5734 = vmatpush3.msk.msra.mxu1 %vm1071_vm14, %v1045_v45  ;;  %v1374_v49 = vpop.permute.xlu0 %1373  ;;  %5584 = vmatmul.mubr.msk.f32.vlgmr.msra.gmra.mrb[0].mxu0 %vm7036_vm11, %v1047_v29  ;;  %v1372_v33 = vpop.permute.xlu1 %1371 }
 0x2e2   : > { %5587 = vmatprep.subr.msk.mxu0 %vm1071_vm14, %v1037_v41  ;;  %v1376_v50 = vsel %vm7011_vm5, %v1372_v33, %v1374_v49  ;;  %5735 = vmatprep.mubr.msk.f32.mxu1 %vm7034_vm9, %v5959_v7 }
 0x2e3   : > { %5588 = vmatpush1.msk.msra.mxu0 %vm1071_vm14, %v1024_v46  ;;  %5738 = vmatprep.subr.mxu1 %v5959_v7 }
 0x2e4   : > { %5592 = vmatprep.subr.msk.mxu0 %vm1071_vm14, %v1376_v50  ;;  %1292 = vmatprep.mubr.f32.mxu0 %v5959_v7 }
 0x2e5   : > { %v1533_v52 = vpop.permute.xlu0 %1532  ;;  %v1370_v53 = vpop.permute.xlu1 %1369 }
 0x2e6   : > { %v1375_v54 = vsel %vm7011_vm5, %v1370_v53, %v1372_v33  ;;  %vm7013_vm5 = vcmask 891904  }
 0x2e7   : > { %5736 = vmatmul.mubr.msk.f32.vlgmr.msra.gmra.mrb[0].mxu1 %vm7036_vm11, %v1046_v51 }
 0x2e8   : > { %5739 = vmatpush3.msk.msra.mxu1 %vm1071_vm14, %v1374_v49  ;;  %5740 = vmatprep.mubr.msk.f32.mxu1 %vm7034_vm9, %v5959_v7 }
 0x2e9   : > { %v1531_v55 = vpop.permute.xlu0 %1530  ;;  %5589 = vmatmul.mubr.msk.f32.vlgmr.msra.gmra.mrb[0].mxu0 %vm7036_vm11, %v1046_v51  ;;  %v1535_v56 = vpop.permute.xlu1 %1534  ;;  %5743 = vmatprep.subr.mxu1 %v5959_v7 }
 0x2ea   : > { %5593 = vmatpush1.msk.msra.mxu0 %vm1071_vm14, %v1375_v54  ;;  %v1538_v57 = vsel %vm7012_vm13, %v1533_v52, %v1535_v56  ;;  %1450 = vmatprep.mubr.f32.mxu0 %v5959_v7  ;;  %v1537_v61 = vsel %vm7012_vm13, %v1531_v55, %v1533_v52  ;;  %vm7033_vm13 = vcmask 752640  }
 0x2eb   : > { %5597 = vmatprep.subr.msk.mxu0 %vm1071_vm14, %v1538_v57 }
 0x2ed   : > { %v1697_v59 = vpop.permute.xlu0 %1696  ;;  %v1695_v60 = vpop.permute.xlu1 %1694 }
 0x2ee   : > { %v1700_v0 = vsel %vm7013_vm5, %v1695_v60, %v1697_v59 }
 0x2ef   : > { %5741 = vmatmul.mubr.msk.f32.vlgmr.msra.gmra.mrb[0].mxu1 %vm7036_vm11, %v1048_v58 }
 0x2f0   : > { %5744 = vmatpush3.msk.msra.mxu1 %vm1071_vm14, %v1535_v56  ;;  %5745 = vmatprep.mubr.msk.f32.mxu1 %vm7034_vm9, %v5959_v7 }
 0x2f1   : > { %v1857_v62 = vpop.permute.xlu0 %1856  ;;  %5594 = vmatmul.mubr.msk.f32.vlgmr.msra.gmra.mrb[0].mxu0 %vm7036_vm11, %v1048_v58  ;;  %v1693_v63 = vpop.permute.xlu1 %1692  ;;  %5748 = vmatprep.subr.mxu1 %v5959_v7 }
 0x2f2   : > { %5598 = vmatpush1.msk.msra.mxu0 %vm1071_vm14, %v1537_v61  ;;  %1612 = vmatprep.mubr.f32.mxu0 %v5959_v7  ;;  %v1699_v4 = vsel %vm7013_vm5, %v1693_v63, %v1695_v60  ;;  %vm7031_vm5 = vcmask 744448  }
 0x2f3   : > { %5602 = vmatprep.subr.msk.mxu0 %vm1071_vm14, %v1700_v0 }
 0x2f5   : > { %v1859_v2 = vpop.permute.xlu1 %1858  ;;  %v1855_v3 = vpop.permute.xlu0 %1854 }
 0x2f6   : > { %v1861_v5 = vsel %vm7037_vm4, %v1857_v62, %v1859_v2  ;;  %v1860_v10 = vsel %vm7037_vm4, %v1855_v3, %v1857_v62  ;;  %vm7044_vm4 = vcmask 916480  }
 0x2f7   : > { %5746 = vmatmul.mubr.msk.f32.vlgmr.msra.gmra.mrb[0].mxu1 %vm7036_vm11, %v1049_v1 }
 0x2f8   : > { %5749 = vmatpush3.msk.msra.mxu1 %vm1071_vm14, %v1697_v59  ;;  %5750 = vmatprep.mubr.msk.f32.mxu1 %vm7034_vm9, %v5959_v7 }
 0x2f9   : > { %5599 = vmatmul.mubr.msk.f32.vlgmr.msra.gmra.mrb[0].mxu0 %vm7036_vm11, %v1049_v1  ;;  %5753 = vmatprep.subr.mxu1 %v5959_v7  ;;  %v2018_v8 = vpop.permute.xlu1 %2017  ;;  %v2020_v9 = vpop.permute.xlu0 %2019 }
 0x2fa   : > { %5603 = vmatpush1.msk.msra.mxu0 %vm1071_vm14, %v1699_v4  ;;  %1774 = vmatprep.mubr.f32.mxu0 %v5959_v7  ;;  %v2023_v12 = vsel %vm7033_vm13, %v2018_v8, %v2020_v9 }
 0x2fb   : > { %5607 = vmatprep.subr.msk.mxu0 %vm1071_vm14, %v1861_v5 }
 0x2fd   : > { %v2016_v11 = vpop.permute.xlu1 %2015  ;;  %v2180_v13 = vpop.permute.xlu0 %2179 }
 0x2fe   : > { %v2022_v16 = vsel %vm7033_vm13, %v2016_v11, %v2018_v8  ;;  %vm2887_vm13 = vcmask 523264  }
 0x2ff   : > { %5751 = vmatmul.mubr.msk.f32.vlgmr.msra.gmra.mrb[0].mxu1 %vm7036_vm11, %v1050_v6 }
 0x300   : > { %5754 = vmatpush3.msk.msra.mxu1 %vm1071_vm14, %v1859_v2  ;;  %5755 = vmatprep.mubr.msk.f32.mxu1 %vm7034_vm9, %v5959_v7 }
 0x301   : > { %5604 = vmatmul.mubr.msk.f32.vlgmr.msra.gmra.mrb[0].mxu0 %vm7036_vm11, %v1050_v6  ;;  %5758 = vmatprep.subr.mxu1 %v5959_v7  ;;  %v2182_v15 = vpop.permute.xlu1 %2181  ;;  %v2178_v17 = vpop.permute.xlu0 %2177 }
 0x302   : > { %5608 = vmatpush1.msk.msra.mxu0 %vm1071_vm14, %v1860_v10  ;;  %1935 = vmatprep.mubr.f32.mxu0 %v5959_v7  ;;  %v2185_v18 = vsel %vm7031_vm5, %v2180_v13, %v2182_v15  ;;  %v2184_v22 = vsel %vm7031_vm5, %v2178_v17, %v2180_v13  ;;  %vm7032_vm5 = vcmask 15360  }
 0x303   : > { %5612 = vmatprep.subr.msk.mxu0 %vm1071_vm14, %v2023_v12 }
 0x305   : > { %v2344_v20 = vpop.permute.xlu0 %2343  ;;  %v2342_v21 = vpop.permute.xlu1 %2341 }
 0x306   : > { %v2346_v23 = vsel %vm1019_vm15, %v2342_v21, %v2344_v20 }
 0x307   : > { %5756 = vmatmul.mubr.msk.f32.vlgmr.msra.gmra.mrb[0].mxu1 %vm7036_vm11, %v1051_v14 }
 0x308   : > { %5759 = vmatpush3.msk.msra.mxu1 %vm1071_vm14, %v2020_v9  ;;  %5760 = vmatprep.mubr.msk.f32.mxu1 %vm7034_vm9, %v5959_v7 }
 0x309   : > { %5609 = vmatmul.mubr.msk.f32.vlgmr.msra.gmra.mrb[0].mxu0 %vm7036_vm11, %v1051_v14  ;;  %5763 = vmatprep.subr.mxu1 %v5959_v7  ;;  %v2340_v28 = vpop.permute.xlu1 %2339 }
 0x30a   : > { %5613 = vmatpush1.msk.msra.mxu0 %vm1071_vm14, %v2022_v16  ;;  %2097 = vmatprep.mubr.f32.mxu0 %v5959_v7  ;;  %v2345_v36 = vsel %vm1019_vm15, %v2340_v28, %v2342_v21 }
 0x30b   : > { %5617 = vmatprep.subr.msk.mxu0 %vm1071_vm14, %v2185_v18 }
 0x30f   : > { %5761 = vmatmul.mubr.msk.f32.vlgmr.msra.gmra.mrb[0].mxu1 %vm7036_vm11, %v1052_v19 }
 0x310   : > { %5764 = vmatpush3.msk.msra.mxu1 %vm1071_vm14, %v2182_v15  ;;  %5765 = vmatprep.mubr.msk.f32.mxu1 %vm7034_vm9, %v5959_v7 }
 0x311   : > { %5614 = vmatmul.mubr.msk.f32.vlgmr.msra.gmra.mrb[0].mxu0 %vm7036_vm11, %v1052_v19  ;;  %5768 = vmatprep.subr.mxu1 %v5959_v7 }
 0x312   : > { %5618 = vmatpush1.msk.msra.mxu0 %vm1071_vm14, %v2184_v22  ;;  %2259 = vmatprep.mubr.f32.mxu0 %v5959_v7 }
 0x313   : > { %5622 = vmatprep.subr.msk.mxu0 %vm1071_vm14, %v2346_v23 }
 0x317   : > { %5766 = vmatmul.mubr.msk.f32.vlgmr.msra.gmra.mrb[0].mxu1 %vm7036_vm11, %v1053_v26 }
 0x318   : > { %5769 = vmatpush3.msk.msra.mxu1 %vm1071_vm14, %v2344_v20  ;;  %5770 = vmatprep.mubr.msk.f32.mxu1 %vm7034_vm9, %v5959_v7 }
 0x319   : > { %5619 = vmatmul.mubr.msk.f32.vlgmr.msra.gmra.mrb[0].mxu0 %vm7036_vm11, %v1053_v26  ;;  %5773 = vmatprep.subr.mxu1 %v5959_v7 }
 0x31a   : > { %5623 = vmatpush1.msk.msra.mxu0 %vm1071_vm14, %v2345_v36  ;;  %2420 = vmatprep.mubr.f32.mxu0 %v5959_v7 }
 0x31f   : > { %5771 = vmatmul.mubr.msk.f32.vlgmr.msra.gmra.mrb[0].mxu1 %vm7036_vm11, %v1054_v38 }
 0x320   : > { %5775 = vmatprep.mubr.msk.f32.mxu1 %vm7034_vm9, %v5959_v7  ;;  %vm2889_vm9 = vcmask 654336  }
 0x321   : > { %5624 = vmatmul.mubr.msk.f32.vlgmr.msra.gmra.mrb[0].mxu0 %vm7036_vm11, %v1054_v38 }
 0x322   : > { %3666 = vmatprep.mubr.f32.mxu0 %v5959_v7 }
 0x3f2   : > { %v2493_v32 = vpop.f32.mrb[0].mxu1 }
 0x3f3   : > { %2548 = vrot.lane.b32.xlu0 %v2493_v32, %s5985_s28  ;;  %v5772_v37 = vpop.f32.mrb[1].mxu1 }
 0x3f4   : > { %v2422_v40 = vpop.f32.mrb[0].mxu0 }
 0x3f5   : > { %2504 = vrot.lane.b32.xlu1 %v2422_v40, %s7020_s29  ;;  %v2424_v41 = vpop.f32.mrb[1].mxu0  ;;  %s7028_s29 = smov 94  }
 0x3f7   : > { %2501 = vrot.lane.b32.xlu0 %v2422_v40, %s7022_s11  ;;  %s5993_s11 = smov 58  }
 0x3f9   : > { %2520 = vrot.lane.b32.xlu1 %v2422_v40, %s5986_s26 }
 0x3fb   : > { %2507 = vrot.lane.b32.xlu0 %v2422_v40, %s7024_s27  ;;  %s7041_s27 = smov 76  }
 0x3fd   : > { %2510 = vrot.lane.b32.xlu1 %v2422_v40, %s7025_s12  ;;  %s7040_s12 = smov 40  }
 0x3ff   : > { %2513 = vrot.lane.b32.xlu0 %v2422_v40, %s7026_s25  ;;  %s7038_s25 = smov 22  }
 0x401   : > { %2516 = vrot.lane.b32.xlu1 %v2422_v40, %s7027_s13  ;;  %s7050_s13 = smov 34  }
 0x403   : > { %2530 = vrot.lane.b32.xlu0 %v2424_v41, %s7028_s29  ;;  %s6520_s29 = sshll.u32 %s7124_s10, 2 }
 0x405   : > { %2527 = vrot.lane.b32.xlu1 %v2424_v41, %s5952_s15 }
 0x407   : > { %2536 = vrot.lane.b32.xlu0 %v2424_v41, %s5993_s11 }
 0x409   : > { %2533 = vrot.lane.b32.xlu1 %v2424_v41, %s7041_s27  ;;  %s7049_s27 = smov 36  }
 0x40b   : > { %2522 = vrot.lane.b32.xlu0 %v2424_v41, %s5986_s26 }
 0x40d   : > { %2546 = vrot.lane.b32.xlu1 %v2424_v41, %s5985_s28 }
 0x40f   : > { %2539 = vrot.lane.b32.xlu0 %v2424_v41, %s7040_s12  ;;  %s7048_s12 = smov 88  }
 0x411   : > { %2542 = vrot.lane.b32.xlu1 %v2424_v41, %s7038_s25  ;;  %s387_s25 = scalar_lea.vmem %s6981_s6, %s6520_s29 }
 0x413   : > { %2552 = vrot.lane.b32.xlu0 %v2493_v32, %s7039_s24  ;;  %s383_s24 = scalar_lea.vmem %s6980_s5, %s6520_s29 }
 0x415   : > { %2905 = vperm.xlu1 %5936, %v2902_v30  }
 0x465   : > { %v2549_v34 = vpop.permute.xlu0 %2548 }
 0x467   : > { %v2505_v43 = vpop.permute.xlu1 %2504 }
 0x468   : > { %v2555_v45 = vcombine.low %v2422_v40, %v2505_v43 }
 0x469   : > { %v2502_v39 = vpop.permute.xlu0 %2501 }
 0x46a   : > { %v2562_v47 = vrot.slane %v2555_v45, %v6100_v24 }
 0x46b   : > { %v2521_v44 = vpop.permute.xlu1 %2520 }
 0x46d   : > { %v2508_v46 = vpop.permute.xlu0 %2507 }
 0x46e   : > { %v2563_v25 = vcombine.low %v2502_v39, %v2508_v46 }
 0x46f   : > { %v2511_v29 = vpop.permute.xlu1 %2510 }
 0x470   : > { %v2570_v27 = vrot.slane %v2563_v25, %v6100_v24 }
 0x471   : > { %v2514_v31 = vpop.permute.xlu0 %2513 }
 0x472   : > { %v2587_v48 = vcombine.low %v2562_v47, %v2570_v27  ;;  %v2588_v49 = vcombine.high %v2562_v47, %v2570_v27 }
 0x473   : > { %v2517_v33 = vpop.permute.xlu1 %2516 }
 0x474   : > { %v2595_v50 = vrot.slane %v2587_v48, %v6106_v35  ;;  %v2602_v51 = vrot.slane %v2588_v49, %v6106_v35  ;;  %v2571_v0 = vcombine.low %v2511_v29, %v2517_v33 }
 0x475   : > { %v2531_v52 = vpop.permute.xlu0 %2530 }
 0x476   : > { %v5627_v53 = vcombine.low %v2595_v50, %v2602_v51  ;;  %v5629_v54 = vcombine.high %v2595_v50, %v2602_v51  ;;  %v2578_v11 = vrot.slane %v2571_v0, %v6100_v24 }
 0x477   : > { %v2528_v55 = vpop.permute.xlu1 %2527 }
 0x478   : > { %v2699_v56 = vrot.slane %v5627_v53, %v6100_v24  ;;  %v2715_v57 = vrot.slane %v5629_v54, %v6100_v24 }
 0x479   : > { %v2537_v58 = vpop.permute.xlu0 %2536 }
 0x47a   : > { %v2631_v59 = vcombine.low %v2531_v52, %v2537_v58  ;;  %v2724_v60 = vcombine.high %v2699_v56, %v2715_v57  ;;  %v2723_v37 = vcombine.low %v2699_v56, %v2715_v57 }
 0x47b   : > { %v2534_v61 = vpop.permute.xlu1 %2533 }
 0x47c   : > { %v2623_v62 = vcombine.low %v2528_v55, %v2534_v61  ;;  %v2738_v63 = vrot.slane %v2724_v60, %v6106_v35  ;;  %v2638_v2 = vrot.slane %v2631_v59, %v6100_v24  ;;  %v2731_v25 = vrot.slane %v2723_v37, %v6106_v35 }
 0x47d   : > { %v2523_v1 = vpop.permute.xlu0 %2522 }
 0x47e   : > { %v2630_v3 = vrot.slane %v2623_v62, %v6100_v24  ;;  %v2525_v4 = vsel %vm7032_vm5, %v2521_v44, %v2523_v1  ;;  %2832 = vrot.lane.b32.xlu0 %v2738_v63, %s5958_s21  ;;  %v2756_v10 = vcombine.high %v2738_v63, %v5959_v7  ;;  %v2755_v51 = vcombine.high %v2731_v25, %v5959_v7 }
 0x47f   : > { %v2579_v5 = vcombine.low %v2514_v31, %v2525_v4  ;;  %v2547_v8 = vpop.permute.xlu1 %2546  ;;  %vm2885_vm5 = vcmask 392192  }
 0x480   : > { %v2655_v6 = vcombine.low %v2630_v3, %v2638_v2  ;;  %v2656_v9 = vcombine.high %v2630_v3, %v2638_v2  ;;  %v2550_v13 = vsel %vm7036_vm11, %v2547_v8, %v2549_v34  ;;  %vm7045_vm11 = vcmask 785408  }
 0x481   : > { %v2586_v12 = vrot.slane %v2579_v5, %v6100_v24  ;;  %v2540_v14 = vpop.permute.xlu0 %2539 }
 0x482   : > { %v2663_v15 = vrot.slane %v2655_v6, %v6106_v35  ;;  %v2670_v16 = vrot.slane %v2656_v9, %v6106_v35  ;;  %2836 = vrot.lane.b32.xlu0 %v2756_v10, %s5954_s17  ;;  %v2639_v21 = vcombine.low %v2540_v14, %v2550_v13 }
 0x483   : > { %v2603_v17 = vcombine.low %v2578_v11, %v2586_v12  ;;  %v2604_v18 = vcombine.high %v2578_v11, %v2586_v12  ;;  %v2543_v26 = vpop.permute.xlu1 %2542 }
 0x484   : > { %v5631_v19 = vcombine.low %v2663_v15, %v2670_v16  ;;  %v5633_v20 = vcombine.high %v2663_v15, %v2670_v16  ;;  %v2646_v42 = vrot.slane %v2639_v21, %v6100_v24 }
 0x485   : > { %v2611_v22 = vrot.slane %v2603_v17, %v6106_v35  ;;  %v2618_v23 = vrot.slane %v2604_v18, %v6106_v35  ;;  %v2553_v28 = vpop.permute.xlu0 %2552 }
 0x486   : > { %v2647_v36 = vcombine.low %v2543_v26, %v2553_v28  ;;  %v2767_v38 = vrot.slane %v5631_v19, %v6100_v24  ;;  %v2783_v32 = vrot.slane %v5633_v20, %v6100_v24 }
 0x487   : > { %v5628_v40 = vcombine.low %v2611_v22, %v2618_v23  ;;  %v5630_v41 = vcombine.high %v2611_v22, %v2618_v23 }
 0x488   : > { %v2654_v30 = vrot.slane %v2647_v36, %v6100_v24  ;;  %v2792_v34 = vcombine.high %v2767_v38, %v2783_v32  ;;  %v2791_v49 = vcombine.low %v2767_v38, %v2783_v32 }
 0x489   : > { %v2706_v43 = vrot.slane %v5628_v40, %v6100_v24  ;;  %v2722_v39 = vrot.slane %v5630_v41, %v6100_v24 }
 0x48a   : > { %v2671_v44 = vcombine.low %v2646_v42, %v2654_v30  ;;  %v2672_v45 = vcombine.high %v2646_v42, %v2654_v30  ;;  %v2806_v46 = vrot.slane %v2792_v34, %v6106_v35  ;;  %v2799_v55 = vrot.slane %v2791_v49, %v6106_v35 }
 0x48b   : > { %v2739_v29 = vcombine.low %v2706_v43, %v2722_v39  ;;  %v2740_v48 = vcombine.high %v2706_v43, %v2722_v39 }
 0x48c   : > { %v2679_v47 = vrot.slane %v2671_v44, %v6106_v35  ;;  %v2686_v27 = vrot.slane %v2672_v45, %v6106_v35  ;;  %2860 = vrot.lane.b32.xlu1 %v2806_v46, %s5958_s21  ;;  %v2823_v59 = vcombine.high %v2799_v55, %v5959_v7  ;;  %v2824_v62 = vcombine.high %v2806_v46, %v5959_v7  ;;  %v2931_v44 = vld [vmem:[%s383_s24] sm:$0xf]  ;;  %s7046_s24 = smov 3  }
 0x48d   : > { %v2747_v31 = vrot.slane %v2739_v29, %v6106_v35  ;;  %v2754_v54 = vrot.slane %v2740_v48, %v6106_v35 }
 0x48e   : > { %v5632_v33 = vcombine.low %v2679_v47, %v2686_v27  ;;  %v5634_v50 = vcombine.high %v2679_v47, %v2686_v27 }
 0x48f   : > { %2840 = vrot.lane.b32.xlu0 %v2747_v31, %s5957_s20  ;;  %v2757_v61 = vcombine.high %v2747_v31, %v5959_v7  ;;  %v2758_v63 = vcombine.high %v2754_v54, %v5959_v7 }
 0x490   : > { %2828 = vrot.lane.b32.xlu1 %v2755_v51, %s5953_s16  ;;  %v2774_v52 = vrot.slane %v5632_v33, %v6100_v24  ;;  %v2790_v53 = vrot.slane %v5634_v50, %v6100_v24  ;;  %v2939_v33 = vld [vmem:[%s387_s25] sm:$0xf]  ;;  %s7051_s25 = smov 124  }
 0x492   : > { %v2807_v56 = vcombine.low %v2774_v52, %v2790_v53  ;;  %v2808_v58 = vcombine.high %v2774_v52, %v2790_v53 }
 0x493   : > { %2848 = vrot.lane.b32.xlu0 %v2754_v54, %s5955_s18 }
 0x494   : > { %v2815_v57 = vrot.slane %v2807_v56, %v6106_v35  ;;  %v2822_v60 = vrot.slane %v2808_v58, %v6106_v35  ;;  %v2906_v3 = vpop.permute.xlu1 %2905 }
 0x496   : > { %2868 = vrot.lane.b32.xlu1 %v2815_v57, %s5957_s20  ;;  %v2825_v0 = vcombine.high %v2815_v57, %v5959_v7  ;;  %v2826_v1 = vcombine.high %v2822_v60, %v5959_v7 }
 0x497   : > { %2856 = vrot.lane.b32.xlu0 %v2823_v59, %s5953_s16 }
 0x49a   : > { %2876 = vrot.lane.b32.xlu1 %v2822_v60, %s5955_s18 }
 0x49b   : > { %2844 = vrot.lane.b32.xlu0 %v2757_v61, %s7042_s19 }
 0x49e   : > { %2864 = vrot.lane.b32.xlu1 %v2824_v62, %s5954_s17 }
 0x49f   : > { %2852 = vrot.lane.b32.xlu0 %v2758_v63, %s5952_s15 }
 0x4a2   : > { %2872 = vrot.lane.b32.xlu1 %v2825_v0, %s7042_s19 }
 0x4a6   : > { %2880 = vrot.lane.b32.xlu1 %v2826_v1, %s5952_s15 }
 0x4f0   : > { %v2833_v2 = vpop.permute.xlu0 %2832 }
 0x4f4   : > { %v2837_v4 = vpop.permute.xlu0 %2836 }
 0x4fe   : > { %v2861_v5 = vpop.permute.xlu1 %2860 }
 0x501   : > { %v2841_v8 = vpop.permute.xlu0 %2840 }
 0x502   : > { %v2829_v6 = vpop.permute.xlu1 %2828 }
 0x503   : > { %v2883_v10 = vsel %vm411_vm0, %v2731_v25, %v2829_v6 }
 0x504   : > { %v2884_v13 = vsel %vm1040_vm6, %v2883_v10, %v2833_v2 }
 0x505   : > { %v2849_v9 = vpop.permute.xlu0 %2848  ;;  %v2886_v17 = vsel %vm2885_vm5, %v2884_v13, %v2837_v4 }
 0x506   : > { %v2888_v18 = vsel %vm2887_vm13, %v2886_v17, %v2841_v8 }
 0x508   : > { %v2869_v11 = vpop.permute.xlu1 %2868 }
 0x509   : > { %v2857_v12 = vpop.permute.xlu0 %2856 }
 0x50a   : > { %v2895_v15 = vsel %vm411_vm0, %v2799_v55, %v2857_v12 }
 0x50b   : > { %v2896_v19 = vsel %vm1040_vm6, %v2895_v15, %v2861_v5 }
 0x50c   : > { %v2877_v14 = vpop.permute.xlu1 %2876 }
 0x50d   : > { %v2845_v16 = vpop.permute.xlu0 %2844 }
 0x50e   : > { %v2890_v21 = vsel %vm2889_vm9, %v2888_v18, %v2845_v16 }
 0x50f   : > { %v2892_v26 = vsel %vm7045_vm11, %v2890_v21, %v2849_v9 }
 0x510   : > { %v2865_v20 = vpop.permute.xlu1 %2864 }
 0x511   : > { %v2897_v22 = vsel %vm2885_vm5, %v2896_v19, %v2865_v20  ;;  %v2853_v23 = vpop.permute.xlu0 %2852 }
 0x512   : > { %v2898_v28 = vsel %vm2887_vm13, %v2897_v22, %v2869_v11  ;;  %v2894_v38 = vsel %vm7044_vm4, %v2892_v26, %v2853_v23 }
 0x513   : > { %v2908_v37 = vadd.f32 %v2906_v3, %v2894_v38 }
 0x514   : > { %v2873_v36 = vpop.permute.xlu1 %2872 }
 0x515   : > { %v2899_v32 = vsel %vm2889_vm9, %v2898_v28, %v2873_v36  ;;  %v2910_v34 = vsel %vm1071_vm14, %v2908_v37, 0.0 }
 0x516   : > { %v2900_v40 = vsel %vm7045_vm11, %v2899_v32, %v2877_v14  ;;  %vm7065_vm11 = vcmask 572416  }
 0x518   : > { %v2881_v41 = vpop.permute.xlu1 %2880 }
 0x519   : > { %v2901_v42 = vsel %vm7044_vm4, %v2900_v40, %v2881_v41  ;;  %vm7064_vm4 = vcmask 293888  }
 0x51a   : > { %v2909_v30 = vadd.f32 %v2906_v3, %v2901_v42 }
 0x51c   : > { %v2911_v43 = vsel %vm1071_vm14, %v2909_v30, 0.0 }
 0x51d   : > { %v2912_v39 = vadd.f32 %v2911_v43, %v2910_v34 }
 0x51f   : > { %2913 = vadd.xlane.f32.xlu0 %v2912_v39 }
 0x535   : > { %2934 = vperm.xlu0 %5937, %v2931_v44  }
 0x5ac   : > { %v2914_v45 = vpop.xlane.xlu0 %2913 }
 0x5ad   : > { %v2916_v46 = vmul.f32 0.00390625, %v2914_v45 }
 0x5af   : > { %v2917_v25 = vsub.f32 %v2908_v37, %v2916_v46  ;;  %v2918_v29 = vsub.f32 %v2909_v30, %v2916_v46 }
 0x5b1   : > { %v2919_v47 = vmul.f32 %v2917_v25, %v2917_v25  ;;  %v2920_v27 = vmul.f32 %v2918_v29, %v2918_v29 }
 0x5b3   : > { %v2921_v31 = vsel %vm1071_vm14, %v2919_v47, 0.0  ;;  %v2922_v48 = vsel %vm1071_vm14, %v2920_v27, 0.0 }
 0x5b4   : > { %v2923_v49 = vadd.f32 %v2922_v48, %v2921_v31  ;;  %v2935_v54 = vpop.permute.xlu0 %2934 }
 0x5b6   : > { %2924 = vadd.xlane.f32.xlu1 %v2923_v49 }
 0x5c7   : > { %2942 = vperm.xlu1 %5936, %v2939_v33  }
 0x643   : > { %v2925_v50 = vpop.xlane.xlu1 %2924 }
 0x644   : > { %v2926_v51 = vmul.f32 0.00390625, %v2925_v50 }
 0x646   : > { %v2927_v52 = vadd.f32 1e-08, %v2926_v51 }
 0x647   : > { %v2943_v58 = vpop.permute.xlu1 %2942 }
 0x648   : > { %5939 = vrsqrt.f32 %v2927_v52 }
 0x652   : > { %v5940_v53 = vpop.eup %5939 }
 0x653   : > { %v2929_v55 = vmul.f32 %v5940_v53, %v2917_v25  ;;  %v2930_v56 = vmul.f32 %v5940_v53, %v2918_v29 }
 0x655   : > { %v2937_v57 = vmul.f32 %v2935_v54, %v2929_v55  ;;  %v2938_v60 = vmul.f32 %v2935_v54, %v2930_v56 }
 0x657   : > { %v2945_v59 = vadd.f32 %v2943_v58, %v2937_v57  ;;  %v2946_v62 = vadd.f32 %v2943_v58, %v2938_v60 }
 0x659   : > { %v2947_v61 = vmax.f32 %v2945_v59, 0.0  ;;  %v2948_v63 = vmax.f32 %v2946_v62, 0.0 }
 0x65b   : > { %2950 = vrot.lane.b32.xlu1 %v2947_v61, %s5952_s15 }
 0x65f   : > { %2954 = vrot.lane.b32.xlu1 %v2947_v61, %s5953_s16 }
 0x663   : > { %2956 = vrot.lane.b32.xlu1 %v2948_v63, %s5953_s16 }
 0x667   : > { %2962 = vrot.lane.b32.xlu1 %v2948_v63, %s5954_s17 }
 0x6cd   : > { %v2951_v0 = vpop.permute.xlu1 %2950 }
 0x6d1   : > { %v2955_v1 = vpop.permute.xlu1 %2954 }
 0x6d2   : > { %v2965_v2 = vsel %vm411_vm0, %v2951_v0, %v2955_v1 }
 0x6d3   : > { %2974 = vrot.lane.b32.xlu0 %v2965_v2, %s7042_s19  ;;  %2968 = vrot.lane.b32.xlu1 %v2965_v2, %s5952_s15 }
 0x6d5   : > { %v2957_v3 = vpop.permute.xlu1 %2956 }
 0x6d6   : > { %v6544_v4 = vsel %vm411_vm0, %v2955_v1, %v2957_v3 }
 0x6d7   : > { %2980 = vrot.lane.b32.xlu0 %v2965_v2, %s5954_s17  ;;  %2971 = vrot.lane.b32.xlu1 %v2965_v2, %s5955_s18 }
 0x6d9   : > { %v2963_v5 = vpop.permute.xlu1 %2962 }
 0x6da   : > { %v2966_v8 = vsel %vm411_vm0, %v2957_v3, %v2963_v5 }
 0x6db   : > { %2986 = vrot.lane.b32.xlu0 %v2965_v2, %s5953_s16  ;;  %2977 = vrot.lane.b32.xlu1 %v2965_v2, %s5957_s20  ;;  %v3155_v19 = vrot.slane %v2966_v8, %v6100_v24 }
 0x6df   : > { %2983 = vrot.lane.b32.xlu1 %v2965_v2, %s5958_s21  ;;  %2992 = vrot.lane.b32.xlu0 %v6544_v4, %s5955_s18 }
 0x6e3   : > { %2998 = vrot.lane.b32.xlu0 %v6544_v4, %s5957_s20  ;;  %2989 = vrot.lane.b32.xlu1 %v6544_v4, %s5952_s15 }
 0x6e7   : > { %3004 = vrot.lane.b32.xlu0 %v6544_v4, %s5958_s21  ;;  %2995 = vrot.lane.b32.xlu1 %v6544_v4, %s7042_s19  ;;  %s7061_s19 = smov 108  }
 0x6eb   : > { %3001 = vrot.lane.b32.xlu1 %v6544_v4, %s5954_s17  ;;  %3011 = vrot.lane.b32.xlu0 %v2966_v8, %s5952_s15 }
 0x6ef   : > { %3007 = vrot.lane.b32.xlu1 %v6544_v4, %s5953_s16 }
 0x745   : > { %v2975_v6 = vpop.permute.xlu0 %2974  ;;  %v2969_v9 = vpop.permute.xlu1 %2968 }
 0x746   : > { %v3021_v42 = vcombine.low %v2969_v9, %v2975_v6 }
 0x748   : > { %v3028_v44 = vrot.slane %v3021_v42, %v6100_v24 }
 0x749   : > { %v2981_v10 = vpop.permute.xlu0 %2980  ;;  %v2972_v12 = vpop.permute.xlu1 %2971 }
 0x74a   : > { %v3013_v37 = vcombine.low %v2965_v2, %v2972_v12 }
 0x74c   : > { %v3020_v34 = vrot.slane %v3013_v37, %v6100_v24 }
 0x74d   : > { %v2987_v11 = vpop.permute.xlu0 %2986  ;;  %v2978_v14 = vpop.permute.xlu1 %2977 }
 0x74e   : > { %v3037_v40 = vcombine.low %v2981_v10, %v2987_v11  ;;  %v3045_v46 = vcombine.low %v3020_v34, %v3028_v44  ;;  %v3046_v27 = vcombine.high %v3020_v34, %v3028_v44 }
 0x750   : > { %v3044_v43 = vrot.slane %v3037_v40, %v6100_v24  ;;  %v3053_v31 = vrot.slane %v3045_v46, %v6106_v35  ;;  %v3060_v50 = vrot.slane %v3046_v27, %v6106_v35 }
 0x751   : > { %v2993_v13 = vpop.permute.xlu0 %2992  ;;  %v2984_v17 = vpop.permute.xlu1 %2983 }
 0x752   : > { %v3029_v38 = vcombine.low %v2978_v14, %v2984_v17  ;;  %v3081_v54 = vcombine.low %v6544_v4, %v2993_v13 }
 0x754   : > { %v3036_v30 = vrot.slane %v3029_v38, %v6100_v24  ;;  %v3088_v60 = vrot.slane %v3081_v54, %v6100_v24 }
 0x755   : > { %v2999_v15 = vpop.permute.xlu0 %2998  ;;  %v2990_v23 = vpop.permute.xlu1 %2989 }
 0x756   : > { %v3061_v45 = vcombine.low %v3036_v30, %v3044_v43  ;;  %v3062_v25 = vcombine.high %v3036_v30, %v3044_v43 }
 0x758   : > { %v3069_v29 = vrot.slane %v3061_v45, %v6106_v35  ;;  %v3076_v48 = vrot.slane %v3062_v25, %v6106_v35 }
 0x759   : > { %v3005_v16 = vpop.permute.xlu0 %3004  ;;  %v2996_v32 = vpop.permute.xlu1 %2995 }
 0x75a   : > { %v3077_v33 = vcombine.low %v3053_v31, %v3069_v29  ;;  %v3097_v51 = vcombine.low %v2999_v15, %v3005_v16  ;;  %v3089_v52 = vcombine.low %v2990_v23, %v2996_v32  ;;  %v3078_v53 = vcombine.high %v3053_v31, %v3069_v29 }
 0x75b   : > { %v3079_v56 = vcombine.low %v3060_v50, %v3076_v48  ;;  %v3080_v59 = vcombine.high %v3060_v50, %v3076_v48 }
 0x75c   : > { %v3104_v57 = vrot.slane %v3097_v51, %v6100_v24  ;;  %v3096_v58 = vrot.slane %v3089_v52, %v6100_v24 }
 0x75d   : > { %v3012_v18 = vpop.permute.xlu0 %3011  ;;  %v3002_v39 = vpop.permute.xlu1 %3001 }
 0x75e   : > { %v3163_v20 = vrot.slane %v3012_v18, %v6100_v24  ;;  %v3113_v62 = vcombine.low %v3088_v60, %v3096_v58  ;;  %v3114_v1 = vcombine.high %v3088_v60, %v3096_v58 }
 0x760   : > { %v3164_v21 = vcombine.low %v3155_v19, %v3163_v20  ;;  %v3165_v22 = vcombine.high %v3155_v19, %v3163_v20  ;;  %v3121_v2 = vrot.slane %v3113_v62, %v6106_v35  ;;  %v3128_v5 = vrot.slane %v3114_v1, %v6106_v35 }
 0x761   : > { %v3008_v47 = vpop.permute.xlu1 %3007 }
 0x762   : > { %v3172_v26 = vrot.slane %v3164_v21, %v6106_v35  ;;  %v6567_v28 = vrot.slane %v3165_v22, %v6106_v35  ;;  %v3105_v49 = vcombine.low %v3002_v39, %v3008_v47 }
 0x764   : > { %3198 = vrot.lane.b32.xlu1 %v3172_v26, %s5962_s22  ;;  %v3180_v36 = vcombine.high %v3172_v26, %v5959_v7  ;;  %v6576_v41 = vcombine.high %v6567_v28, %v5959_v7  ;;  %v3112_v55 = vrot.slane %v3105_v49, %v6100_v24 }
 0x766   : > { %3204 = vrot.lane.b32.xlu0 %v3180_v36, %s5962_s22  ;;  %v3129_v61 = vcombine.low %v3104_v57, %v3112_v55  ;;  %v3130_v63 = vcombine.high %v3104_v57, %v3112_v55 }
 0x768   : > { %3210 = vrot.lane.b32.xlu1 %v6567_v28, %s5962_s22  ;;  %v3137_v0 = vrot.slane %v3129_v61, %v6106_v35  ;;  %v3144_v3 = vrot.slane %v3130_v63, %v6106_v35 }
 0x76a   : > { %3216 = vrot.lane.b32.xlu0 %v6576_v41, %s5962_s22  ;;  %v3145_v4 = vcombine.low %v3121_v2, %v3137_v0  ;;  %v3146_v8 = vcombine.high %v3121_v2, %v3137_v0  ;;  %v3147_v6 = vcombine.low %v3128_v5, %v3144_v3  ;;  %v3148_v9 = vcombine.high %v3128_v5, %v3144_v3 }
 0x76c   : > { %3234 = vrot.lane.b32.xlu1 %v3172_v26, %s5963_s23 }
 0x76e   : > { %3240 = vrot.lane.b32.xlu0 %v3180_v36, %s5963_s23 }
 0x770   : > { %3246 = vrot.lane.b32.xlu1 %v6567_v28, %s5963_s23 }
 0x772   : > { %3252 = vrot.lane.b32.xlu0 %v6576_v41, %s5963_s23 }
 0x774   : > { %3270 = vrot.lane.b32.xlu1 %v3172_v26, %s7046_s24 }
 0x776   : > { %3276 = vrot.lane.b32.xlu0 %v3180_v36, %s7046_s24 }
 0x778   : > { %3194 = vrot.lane.b32.xlu1 %v3077_v33, %s5962_s22 }
 0x77a   : > { %3200 = vrot.lane.b32.xlu0 %v3078_v53, %s5962_s22 }
 0x77c   : > { %3206 = vrot.lane.b32.xlu1 %v3079_v56, %s5962_s22 }
 0x77e   : > { %3212 = vrot.lane.b32.xlu0 %v3080_v59, %s5962_s22 }
 0x780   : > { %3230 = vrot.lane.b32.xlu1 %v3077_v33, %s5963_s23 }
 0x782   : > { %3236 = vrot.lane.b32.xlu0 %v3078_v53, %s5963_s23 }
 0x784   : > { %3242 = vrot.lane.b32.xlu1 %v3079_v56, %s5963_s23 }
 0x786   : > { %3248 = vrot.lane.b32.xlu0 %v3080_v59, %s5963_s23 }
 0x788   : > { %3196 = vrot.lane.b32.xlu1 %v3145_v4, %s5962_s22 }
 0x78a   : > { %3202 = vrot.lane.b32.xlu0 %v3146_v8, %s5962_s22 }
 0x78c   : > { %3208 = vrot.lane.b32.xlu1 %v3147_v6, %s5962_s22 }
 0x78e   : > { %3214 = vrot.lane.b32.xlu0 %v3148_v9, %s5962_s22 }
 0x790   : > { %3232 = vrot.lane.b32.xlu1 %v3145_v4, %s5963_s23 }
 0x792   : > { %3238 = vrot.lane.b32.xlu0 %v3146_v8, %s5963_s23 }
 0x794   : > { %3244 = vrot.lane.b32.xlu1 %v3147_v6, %s5963_s23 }
 0x796   : > { %3250 = vrot.lane.b32.xlu0 %v3148_v9, %s5963_s23  ;;  %s7047_s23 = smov 52  }
 0x798   : > { %3266 = vrot.lane.b32.xlu1 %v3077_v33, %s7046_s24 }
 0x79a   : > { %3272 = vrot.lane.b32.xlu0 %v3078_v53, %s7046_s24 }
 0x79c   : > { %3278 = vrot.lane.b32.xlu1 %v3079_v56, %s7046_s24 }
 0x79e   : > { %3284 = vrot.lane.b32.xlu0 %v3080_v59, %s7046_s24 }
 0x7a0   : > { %3268 = vrot.lane.b32.xlu1 %v3145_v4, %s7046_s24 }
 0x7a2   : > { %3274 = vrot.lane.b32.xlu0 %v3146_v8, %s7046_s24 }
 0x7a4   : > { %3280 = vrot.lane.b32.xlu1 %v3147_v6, %s7046_s24 }
 0x7a6   : > { %3286 = vrot.lane.b32.xlu0 %v3148_v9, %s7046_s24 }
 0x7a8   : > { %3282 = vrot.lane.b32.xlu1 %v6567_v28, %s7046_s24 }
 0x7aa   : > { %3288 = vrot.lane.b32.xlu0 %v6576_v41, %s7046_s24  ;;  %s7052_s24 = smov 70  }
 0x7d6   : > { %v3199_v10 = vpop.permute.xlu1 %3198 }
 0x7d8   : > { %v3205_v11 = vpop.permute.xlu0 %3204 }
 0x7da   : > { %v3211_v12 = vpop.permute.xlu1 %3210 }
 0x7dc   : > { %v3217_v13 = vpop.permute.xlu0 %3216 }
 0x7de   : > { %v3235_v14 = vpop.permute.xlu1 %3234 }
 0x7df   : > { %v3304_v48 = vsel %vm756_vm1, %v3199_v10, %v3235_v14 }
 0x7e0   : > { %v3241_v15 = vpop.permute.xlu0 %3240 }
 0x7e1   : > { %v3307_v50 = vsel %vm756_vm1, %v3205_v11, %v3241_v15 }
 0x7e2   : > { %v3247_v16 = vpop.permute.xlu1 %3246 }
 0x7e3   : > { %v3310_v55 = vsel %vm756_vm1, %v3211_v12, %v3247_v16 }
 0x7e4   : > { %v3253_v17 = vpop.permute.xlu0 %3252 }
 0x7e5   : > { %v3313_v59 = vsel %vm756_vm1, %v3217_v13, %v3253_v17 }
 0x7e6   : > { %v3271_v18 = vpop.permute.xlu1 %3270 }
 0x7e7   : > { %v3316_v0 = vsel %vm769_vm2, %v3304_v48, %v3271_v18 }
 0x7e8   : > { %v3277_v19 = vpop.permute.xlu0 %3276 }
 0x7e9   : > { %v3319_v14 = vsel %vm769_vm2, %v3307_v50, %v3277_v19 }
 0x7ea   : > { %v3195_v20 = vpop.permute.xlu1 %3194 }
 0x7ec   : > { %v3201_v21 = vpop.permute.xlu0 %3200 }
 0x7ee   : > { %v3207_v22 = vpop.permute.xlu1 %3206 }
 0x7f0   : > { %v3213_v23 = vpop.permute.xlu0 %3212 }
 0x7f2   : > { %v3231_v26 = vpop.permute.xlu1 %3230 }
 0x7f3   : > { %v3302_v10 = vsel %vm756_vm1, %v3195_v20, %v3231_v26 }
 0x7f4   : > { %v3237_v36 = vpop.permute.xlu0 %3236 }
 0x7f5   : > { %v3305_v60 = vsel %vm756_vm1, %v3201_v21, %v3237_v36 }
 0x7f6   : > { %v3243_v28 = vpop.permute.xlu1 %3242 }
 0x7f7   : > { %v3308_v1 = vsel %vm756_vm1, %v3207_v22, %v3243_v28 }
 0x7f8   : > { %v3249_v38 = vpop.permute.xlu0 %3248 }
 0x7f9   : > { %v3311_v56 = vsel %vm756_vm1, %v3213_v23, %v3249_v38 }
 0x7fa   : > { %v3197_v32 = vpop.permute.xlu1 %3196 }
 0x7fc   : > { %v3203_v37 = vpop.permute.xlu0 %3202 }
 0x7fe   : > { %v3209_v40 = vpop.permute.xlu1 %3208 }
 0x800   : > { %v3215_v41 = vpop.permute.xlu0 %3214 }
 0x802   : > { %v3233_v42 = vpop.permute.xlu1 %3232 }
 0x803   : > { %v3303_v47 = vsel %vm756_vm1, %v3197_v32, %v3233_v42 }
 0x804   : > { %v3239_v30 = vpop.permute.xlu0 %3238 }
 0x805   : > { %v3306_v51 = vsel %vm756_vm1, %v3203_v37, %v3239_v30 }
 0x806   : > { %v3245_v34 = vpop.permute.xlu1 %3244 }
 0x807   : > { %v3309_v27 = vsel %vm756_vm1, %v3209_v40, %v3245_v34 }
 0x808   : > { %v3251_v43 = vpop.permute.xlu0 %3250 }
 0x809   : > { %v3312_v52 = vsel %vm756_vm1, %v3215_v41, %v3251_v43  ;;  %vm7062_vm1 = vcmask 424960  }
 0x80a   : > { %v3267_v39 = vpop.permute.xlu1 %3266 }
 0x80b   : > { %v3314_v15 = vsel %vm769_vm2, %v3302_v10, %v3267_v39 }
 0x80c   : > { %v3273_v44 = vpop.permute.xlu0 %3272 }
 0x80d   : > { %v3317_v2 = vsel %vm769_vm2, %v3305_v60, %v3273_v44 }
 0x80e   : > { %v3279_v45 = vpop.permute.xlu1 %3278 }
 0x80f   : > { %v3320_v4 = vsel %vm769_vm2, %v3308_v1, %v3279_v45 }
 0x810   : > { %v3285_v46 = vpop.permute.xlu0 %3284  ;;  %v3326_v18 = vcombine.low %v3314_v15, %v3320_v4  ;;  %v3327_v34 = vcombine.high %v3314_v15, %v3320_v4 }
 0x811   : > { %v3323_v61 = vsel %vm769_vm2, %v3311_v56, %v3285_v46 }
 0x812   : > { %v3269_v25 = vpop.permute.xlu1 %3268  ;;  %v3342_v11 = vcombine.low %v3317_v2, %v3323_v61  ;;  %v3334_v19 = vrot.slane %v3326_v18, %v6100_v24  ;;  %v3343_v41 = vcombine.high %v3317_v2, %v3323_v61  ;;  %v3341_v46 = vrot.slane %v3327_v34, %v6100_v24 }
 0x813   : > { %v3315_v49 = vsel %vm769_vm2, %v3303_v47, %v3269_v25 }
 0x814   : > { %v3275_v29 = vpop.permute.xlu0 %3274  ;;  %v3350_v28 = vrot.slane %v3342_v11, %v6100_v24  ;;  %v3357_v39 = vrot.slane %v3343_v41, %v6100_v24 }
 0x815   : > { %v3318_v57 = vsel %vm769_vm2, %v3306_v51, %v3275_v29 }
 0x816   : > { %v3281_v31 = vpop.permute.xlu1 %3280  ;;  %v3359_v42 = vcombine.high %v3334_v19, %v3350_v28  ;;  %v3374_v29 = vcombine.low %v3341_v46, %v3357_v39  ;;  %v3375_v47 = vcombine.high %v3341_v46, %v3357_v39  ;;  %v3358_v48 = vcombine.low %v3334_v19, %v3350_v28 }
 0x817   : > { %v3321_v33 = vsel %vm769_vm2, %v3309_v27, %v3281_v31 }
 0x818   : > { %v3394_v53 = vcombine.low %v3315_v49, %v3321_v33  ;;  %v3287_v54 = vpop.permute.xlu0 %3286  ;;  %v3395_v16 = vcombine.high %v3315_v49, %v3321_v33  ;;  %v3373_v45 = vrot.slane %v3359_v42, %v6106_v35  ;;  %v3389_v49 = vrot.slane %v3375_v47, %v6106_v35  ;;  %v3575_v47 = vld [vmem:[%s6978_s3 + $0x8] sm:$0xf] }
 0x819   : > { %v3324_v58 = vsel %vm769_vm2, %v3312_v52, %v3287_v54  ;;  %v3382_v33 = vrot.slane %v3374_v29, %v6106_v35  ;;  %v3366_v51 = vrot.slane %v3358_v48, %v6106_v35 }
 0x81a   : > { %v3410_v62 = vcombine.low %v3318_v57, %v3324_v58  ;;  %v3283_v63 = vpop.permute.xlu1 %3282  ;;  %v3402_v5 = vrot.slane %v3394_v53, %v6100_v24  ;;  %v3411_v8 = vcombine.high %v3318_v57, %v3324_v58  ;;  %v3409_v38 = vrot.slane %v3395_v16, %v6100_v24 }
 0x81b   : > { %v3322_v3 = vsel %vm769_vm2, %v3310_v55, %v3283_v63  ;;  %v3393_v52 = vcombine.high %v3389_v49, %v5959_v7  ;;  %v3392_v53 = vcombine.high %v3382_v33, %v5959_v7  ;;  %v3390_v54 = vcombine.high %v3366_v51, %v5959_v7 }
 0x81c   : > { %v3418_v6 = vrot.slane %v3410_v62, %v6100_v24  ;;  %v3289_v9 = vpop.permute.xlu0 %3288  ;;  %v3462_v12 = vcombine.low %v3316_v0, %v3322_v3  ;;  %v3425_v22 = vrot.slane %v3411_v8, %v6100_v24  ;;  %v3391_v56 = vcombine.high %v3373_v45, %v5959_v7 }
 0x81d   : > { %v3325_v13 = vsel %vm769_vm2, %v3313_v59, %v3289_v9  ;;  %vm7063_vm2 = vcmask 146432  }
 0x81e   : > { %v3426_v17 = vcombine.low %v3402_v5, %v3418_v6  ;;  %v3470_v21 = vcombine.low %v3319_v14, %v3325_v13  ;;  %v3427_v23 = vcombine.high %v3402_v5, %v3418_v6  ;;  %v3469_v20 = vrot.slane %v3462_v12, %v6100_v24 }
 0x81f   : > { %v3442_v37 = vcombine.low %v3409_v38, %v3425_v22  ;;  %v3443_v44 = vcombine.high %v3409_v38, %v3425_v22 }
 0x820   : > { %v3434_v36 = vrot.slane %v3426_v17, %v6106_v35  ;;  %v3477_v26 = vrot.slane %v3470_v21, %v6100_v24  ;;  %v3441_v40 = vrot.slane %v3427_v23, %v6106_v35 }
 0x821   : > { %v3450_v43 = vrot.slane %v3442_v37, %v6106_v35  ;;  %v3457_v27 = vrot.slane %v3443_v44, %v6106_v35 }
 0x822   : > { %3516 = vrot.lane.b32.xlu0 %v3434_v36, %s5953_s16  ;;  %v3478_v32 = vcombine.low %v3469_v20, %v3477_v26  ;;  %v3458_v25 = vcombine.high %v3434_v36, %v5959_v7  ;;  %v3459_v31 = vcombine.high %v3441_v40, %v5959_v7 }
 0x823   : > { %v3461_v50 = vcombine.high %v3457_v27, %v5959_v7  ;;  %v3460_v57 = vcombine.high %v3450_v43, %v5959_v7 }
 0x824   : > { %v3485_v30 = vrot.slane %v3478_v32, %v6106_v35 }
 0x826   : > { %3524 = vrot.lane.b32.xlu0 %v3441_v40, %s7047_s23  ;;  %3548 = vrot.lane.b32.xlu1 %v3485_v30, %s5958_s21  ;;  %s7053_s23 = smov 72   ;;  %v3486_v55 = vcombine.high %v3485_v30, %v5959_v7  ;;  %v3574_v40 = vld [vmem:[%s6978_s3 + $0x4] sm:$0xf] }
 0x82a   : > { %3532 = vrot.lane.b32.xlu0 %v3450_v43, %s7048_s12  ;;  %3492 = vrot.lane.b32.xlu1 %v3373_v45, %s7049_s27  ;;  %s7054_s12 = smov 14   ;;  %s7055_s27 = smov 126   ;;  %v3573_v43 = vld [vmem:[%s6978_s3] sm:$0xf] }
 0x82e   : > { %3520 = vrot.lane.b32.xlu0 %v3458_v25, %s7050_s13  ;;  %3540 = vrot.lane.b32.xlu1 %v3457_v27, %s7051_s25  ;;  %s7056_s13 = smov 90   ;;  %s7057_s25 = smov 18  }
 0x832   : > { %3528 = vrot.lane.b32.xlu0 %v3459_v31, %s7052_s24  ;;  %3500 = vrot.lane.b32.xlu1 %v3382_v33, %s7053_s23  ;;  %s7058_s24 = smov 50   ;;  %s7059_s23 = smov 54  }
 0x836   : > { %3544 = vrot.lane.b32.xlu0 %v3461_v50, %s7054_s12  ;;  %3512 = vrot.lane.b32.xlu1 %v3393_v52, %s7055_s27  ;;  %s7060_s12 = smov 106   ;;  %v3576_v50 = vld [vmem:[%s6978_s3 + $0xc] sm:$0xf] }
 0x83a   : > { %3504 = vrot.lane.b32.xlu0 %v3392_v53, %s7056_s13  ;;  %3488 = vrot.lane.b32.xlu1 %v3390_v54, %s7057_s25  ;;  %s7072_s25 = smov 110  }
 0x83e   : > { %3552 = vrot.lane.b32.xlu0 %v3486_v55, %s7058_s24  ;;  %3496 = vrot.lane.b32.xlu1 %v3391_v56, %s7059_s23  ;;  %s7073_s24 = smov 109   ;;  %v3577_v56 = vld [vmem:[%s6978_s3 + $0x10] sm:$0xf]  ;;  %s7106_s23 = smov 74  }
 0x842   : > { %3536 = vrot.lane.b32.xlu1 %v3460_v57, %s7060_s12  ;;  %s7107_s12 = smov 56  }
 0x846   : > { %3508 = vrot.lane.b32.xlu1 %v3389_v49, %s7061_s19 }
 0x894   : > { %v3517_v58 = vpop.permute.xlu0 %3516 }
 0x898   : > { %v3525_v59 = vpop.permute.xlu0 %3524  ;;  %v3549_v60 = vpop.permute.xlu1 %3548 }
 0x89c   : > { %v3533_v61 = vpop.permute.xlu0 %3532  ;;  %v3493_v62 = vpop.permute.xlu1 %3492 }
 0x8a0   : > { %v3521_v63 = vpop.permute.xlu0 %3520  ;;  %v3541_v0 = vpop.permute.xlu1 %3540 }
 0x8a4   : > { %v3529_v1 = vpop.permute.xlu0 %3528  ;;  %v3501_v2 = vpop.permute.xlu1 %3500 }
 0x8a8   : > { %v3545_v3 = vpop.permute.xlu0 %3544  ;;  %v3513_v4 = vpop.permute.xlu1 %3512 }
 0x8a9   : > { %v3562_v5 = vsel %vm411_vm0, %v3513_v4, %v3517_v58  ;;  %v3569_v9 = vsel %vm1038_vm12, %v3541_v0, %v3545_v3  ;;  %vm7067_vm12 = vcmask 588800  }
 0x8aa   : > { %v3563_v8 = vsel %vm1026_vm3, %v3562_v5, %v3521_v63  ;;  %v3570_v13 = vsel %vm1040_vm6, %v3569_v9, %v3549_v60  ;;  %vm7066_vm3 = vcmask 441344  }
 0x8ab   : > { %v3564_v11 = vsel %vm7062_vm1, %v3563_v8, %v3525_v59  ;;  %vm7068_vm1 = vcmask 867328  }
 0x8ac   : > { %v3505_v6 = vpop.permute.xlu0 %3504  ;;  %v3489_v10 = vpop.permute.xlu1 %3488  ;;  %v3565_v21 = vsel %vm7065_vm11, %v3564_v11, %v3529_v1  ;;  %vm7078_vm11 = vcmask 1039360  }
 0x8ad   : > { %v3555_v12 = vsel %vm7063_vm2, %v3366_v51, %v3489_v10  ;;  %v3566_v23 = vsel %vm1032_vm10, %v3565_v21, %v3533_v61  ;;  %vm7069_vm2 = vcmask 1014784   ;;  %vm7077_vm10 = vmmov 0   ;;  %v3580_v10 = vld [vmem:[%s6978_s3 + $0x1c] sm:$0xf] }
 0x8ae   : > { %v3556_v17 = vsel %vm7064_vm4, %v3555_v12, %v3493_v62  ;;  %vm7070_vm4 = vcmask 883712   ;;  %v3578_v62 = vld [vmem:[%s6978_s3 + $0x14] sm:$0xf] }
 0x8b0   : > { %v3553_v14 = vpop.permute.xlu0 %3552  ;;  %v3497_v15 = vpop.permute.xlu1 %3496 }
 0x8b1   : > { %v3571_v16 = vsel %vm1042_vm7, %v3570_v13, %v3553_v14  ;;  %v3557_v22 = vsel %vm7066_vm3, %v3556_v17, %v3497_v15  ;;  %vm7071_vm7 = vcmask 1031168   ;;  %vm7079_vm3 = vmmov %vm7078_vm11  ;;  %v3581_v15 = vld [vmem:[%s6978_s3 + $0x20] sm:$0xf] }
 0x8b2   : > { %v3572_v18 = vsel %vm1044_vm8, %v3571_v16, 0.0  ;;  %v3558_v28 = vsel %vm7067_vm12, %v3557_v22, %v3501_v2  ;;  %vm7076_vm8 = vcmask 31744  }
 0x8b3   : > { %3589 = vrot.lane.b32.xlu1 %v3572_v18, %s5962_s22  ;;  %v3559_v38 = vsel %vm1019_vm15, %v3558_v28, %v3505_v6  ;;  %vm7080_vm12 = vmmov %vm7076_vm8 }
 0x8b4   : > { %v3537_v36 = vpop.permute.xlu1 %3536 }
 0x8b5   : > { %v3567_v20 = vsel %vm7068_vm1, %v3566_v23, %v3537_v36  ;;  %vm7081_vm1 = vmmov %vm7076_vm8  ;;  %v5416_v36 = vld [vmem:[%s6979_s4] sm:$0xf] }
 0x8b6   : > { %v3568_v26 = vsel %vm7069_vm2, %v3567_v20, %v3541_v0  ;;  %vm7082_vm2 = vmmov %vm7071_vm7 }
 0x8b7   : > { %3587 = vrot.lane.b32.xlu0 %v3568_v26, %s5962_s22  ;;  %3895 = vrot.lane.b32.xlu1 %v3568_v26, %s7055_s27 }
 0x8b8   : > { %v3509_v19 = vpop.permute.xlu1 %3508 }
 0x8b9   : > { %v3560_v32 = vsel %vm7070_vm4, %v3559_v38, %v3509_v19  ;;  %vm7083_vm4 = vmmov %vm7081_vm1 }
 0x8ba   : > { %v3561_v37 = vsel %vm7071_vm7, %v3560_v32, %v3513_v4  ;;  %vm7084_vm7 = vmmov %vm7082_vm2  ;;  %v3579_v4 = vld [vmem:[%s6978_s3 + $0x18] sm:$0xf] }
 0x8bb   : > { %3585 = vrot.lane.b32.xlu0 %v3561_v37, %s5962_s22  ;;  %3893 = vrot.lane.b32.xlu1 %v3561_v37, %s7055_s27  ;;  %s7074_s22 = smov 92  }
 0x8bf   : > { %3897 = vrot.lane.b32.xlu0 %v3572_v18, %s7055_s27  ;;  %4058 = vrot.lane.b32.xlu1 %v3572_v18, %s7072_s25  ;;  %s7075_s27 = smov 91  }
 0x8c3   : > { %4056 = vrot.lane.b32.xlu0 %v3568_v26, %s7072_s25  ;;  %4217 = vrot.lane.b32.xlu1 %v3568_v26, %s7073_s24 }
 0x8c7   : > { %4054 = vrot.lane.b32.xlu0 %v3561_v37, %s7072_s25  ;;  %4215 = vrot.lane.b32.xlu1 %v3561_v37, %s7073_s24 }
 0x8cb   : > { %4219 = vrot.lane.b32.xlu0 %v3572_v18, %s7073_s24  ;;  %4380 = vrot.lane.b32.xlu1 %v3572_v18, %s7061_s19  ;;  %s7110_s24 = smov 94  }
 0x8cf   : > { %4378 = vrot.lane.b32.xlu0 %v3568_v26, %s7061_s19  ;;  %4539 = vrot.lane.b32.xlu1 %v3568_v26, %s7074_s22 }
 0x8d3   : > { %4376 = vrot.lane.b32.xlu0 %v3561_v37, %s7061_s19  ;;  %4537 = vrot.lane.b32.xlu1 %v3561_v37, %s7074_s22  ;;  %s7108_s19 = smov 38  }
 0x8d7   : > { %4541 = vrot.lane.b32.xlu0 %v3572_v18, %s7074_s22  ;;  %4702 = vrot.lane.b32.xlu1 %v3572_v18, %s7075_s27 }
 0x8db   : > { %4700 = vrot.lane.b32.xlu0 %v3568_v26, %s7075_s27  ;;  %4861 = vrot.lane.b32.xlu1 %v3568_v26, %s7056_s13 }
 0x8df   : > { %4698 = vrot.lane.b32.xlu0 %v3561_v37, %s7075_s27  ;;  %4859 = vrot.lane.b32.xlu1 %v3561_v37, %s7056_s13  ;;  %s7113_s27 = smov 114  }
 0x8e3   : > { %4863 = vrot.lane.b32.xlu0 %v3572_v18, %s7056_s13  ;;  %s7109_s13 = smov 20  }
 0x925   : > { %v3590_v41 = vpop.permute.xlu1 %3589 }
 0x926   : > { %5774 = vmatpush3.msk.msra.mxu1 %vm1071_vm14, %v3590_v41 }
 0x927   : > { %5776 = vmatmul.mubr.msk.f32.vlgmr.msra.gmra.mrb[2].mxu1 %vm7076_vm8, %v3574_v40  ;;  %5778 = vmatprep.subr.mxu1 %v5959_v7  ;;  %vm7085_vm8 = vmmov %vm7081_vm1 }
 0x928   : > { %5779 = vmatpush3.msk.msra.mxu1 %vm1071_vm14, %v3572_v18  ;;  %5780 = vmatprep.mubr.msk.f32.mxu1 %vm7077_vm10, %v5959_v7 }
 0x929   : > { %5783 = vmatprep.subr.mxu1 %v5959_v7  ;;  %v3896_v42 = vpop.permute.xlu1 %3895  ;;  %v3588_v30 = vpop.permute.xlu0 %3587 }
 0x92a   : > { %v3592_v34 = vsel %vm7078_vm11, %v3588_v30, %v3590_v41  ;;  %vm7086_vm11 = vcmask 900096  }
 0x92b   : > { %5635 = vmatprep.subr.msk.mxu0 %vm1071_vm14, %v3592_v34 }
 0x92d   : > { %v3894_v39 = vpop.permute.xlu1 %3893  ;;  %v3586_v44 = vpop.permute.xlu0 %3585 }
 0x92e   : > { %v3591_v45 = vsel %vm7079_vm3, %v3586_v44, %v3588_v30  ;;  %v3899_v31 = vsel %vm7084_vm7, %v3894_v39, %v3896_v42  ;;  %vm7087_vm3 = vmmov %vm7081_vm1 }
 0x92f   : > { %5781 = vmatmul.mubr.msk.f32.vlgmr.msra.gmra.mrb[2].mxu1 %vm7080_vm12, %v3573_v43  ;;  %5636 = vmatpush1.msk.msra.mxu0 %vm1071_vm14, %v3591_v45  ;;  %vm7088_vm12 = vmmov %vm7086_vm11 }
 0x930   : > { %5785 = vmatprep.mubr.msk.f32.mxu1 %vm7077_vm10, %v5959_v7  ;;  %5637 = vmatmul.mubr.msk.f32.vlgmr.msra.gmra.mrb[2].mxu0 %vm7081_vm1, %v3574_v40 }
 0x931   : > { %5640 = vmatprep.subr.msk.mxu0 %vm1071_vm14, %v3568_v26  ;;  %v3898_v46 = vpop.permute.xlu0 %3897  ;;  %3816 = vmatprep.mubr.f32.mxu0 %v5959_v7  ;;  %v4059_v25 = vpop.permute.xlu1 %4058 }
 0x932   : > { %5641 = vmatpush1.msk.msra.mxu0 %vm1071_vm14, %v3561_v37  ;;  %v3900_v29 = vsel %vm7082_vm2, %v3896_v42, %v3898_v46  ;;  %5784 = vmatpush3.msk.msra.mxu1 %vm1071_vm14, %v3898_v46  ;;  %vm7089_vm2 = vcmask 891904  }
 0x933   : > { %5645 = vmatprep.subr.msk.mxu0 %vm1071_vm14, %v3900_v29  ;;  %5788 = vmatprep.subr.mxu1 %v5959_v7  ;;  %vm7091_vm7 = vmmov %vm7089_vm2 }
 0x935   : > { %v4057_v27 = vpop.permute.xlu0 %4056  ;;  %v4218_v48 = vpop.permute.xlu1 %4217 }
 0x936   : > { %v4061_v49 = vsel %vm7086_vm11, %v4057_v27, %v4059_v25  ;;  %vm7093_vm11 = vcmask 883712  }
 0x937   : > { %5786 = vmatmul.mubr.msk.f32.vlgmr.msra.gmra.mrb[2].mxu1 %vm7083_vm4, %v3575_v47  ;;  %vm7090_vm4 = vmmov %vm7081_vm1 }
 0x938   : > { %5789 = vmatpush3.msk.msra.mxu1 %vm1071_vm14, %v4059_v25  ;;  %5790 = vmatprep.mubr.msk.f32.mxu1 %vm7077_vm10, %v5959_v7 }
 0x939   : > { %5642 = vmatmul.mubr.msk.f32.vlgmr.msra.gmra.mrb[2].mxu0 %vm7085_vm8, %v3573_v43  ;;  %5793 = vmatprep.subr.mxu1 %v5959_v7  ;;  %v4055_v33 = vpop.permute.xlu0 %4054  ;;  %v4216_v52 = vpop.permute.xlu1 %4215  ;;  %vm7092_vm8 = vmmov %vm7081_vm1 }
 0x93a   : > { %5646 = vmatpush1.msk.msra.mxu0 %vm1071_vm14, %v3899_v31  ;;  %3974 = vmatprep.mubr.f32.mxu0 %v5959_v7  ;;  %v4060_v53 = vsel %vm7088_vm12, %v4055_v33, %v4057_v27  ;;  %v4221_v59 = vsel %vm7091_vm7, %v4216_v52, %v4218_v48  ;;  %vm7095_vm12 = vmmov %vm7093_vm11 }
 0x93b   : > { %5650 = vmatprep.subr.msk.mxu0 %vm1071_vm14, %v4061_v49 }
 0x93d   : > { %v4220_v51 = vpop.permute.xlu0 %4219  ;;  %v4381_v57 = vpop.permute.xlu1 %4380 }
 0x93e   : > { %v4222_v54 = vsel %vm7089_vm2, %v4218_v48, %v4220_v51  ;;  %vm7096_vm2 = vcmask 752640  }
 0x93f   : > { %5791 = vmatmul.mubr.msk.f32.vlgmr.msra.gmra.mrb[2].mxu1 %vm7087_vm3, %v3576_v50  ;;  %vm7094_vm3 = vmmov %vm7081_vm1 }
 0x940   : > { %5794 = vmatpush3.msk.msra.mxu1 %vm1071_vm14, %v4220_v51  ;;  %5795 = vmatprep.mubr.msk.f32.mxu1 %vm7077_vm10, %v5959_v7  ;;  %vm7098_vm7 = vmmov %vm7096_vm2 }
 0x941   : > { %5647 = vmatmul.mubr.msk.f32.vlgmr.msra.gmra.mrb[2].mxu0 %vm7081_vm1, %v3575_v47  ;;  %5798 = vmatprep.subr.mxu1 %v5959_v7  ;;  %v4379_v55 = vpop.permute.xlu0 %4378  ;;  %v4540_v61 = vpop.permute.xlu1 %4539 }
 0x942   : > { %5651 = vmatpush1.msk.msra.mxu0 %vm1071_vm14, %v4060_v53  ;;  %4135 = vmatprep.mubr.f32.mxu0 %v5959_v7  ;;  %v4383_v60 = vsel %vm7093_vm11, %v4379_v55, %v4381_v57  ;;  %vm7100_vm11 = vcmask 744448  }
 0x943   : > { %5655 = vmatprep.subr.msk.mxu0 %vm1071_vm14, %v4222_v54 }
 0x945   : > { %v4377_v58 = vpop.permute.xlu0 %4376  ;;  %v4538_v0 = vpop.permute.xlu1 %4537 }
 0x946   : > { %v4382_v1 = vsel %vm7095_vm12, %v4377_v58, %v4379_v55  ;;  %v4543_v8 = vsel %vm7098_vm7, %v4538_v0, %v4540_v61  ;;  %vm7102_vm12 = vmmov %vm7100_vm11 }
 0x947   : > { %5796 = vmatmul.mubr.msk.f32.vlgmr.msra.gmra.mrb[2].mxu1 %vm7090_vm4, %v3577_v56  ;;  %vm7097_vm4 = vmmov %vm7081_vm1 }
 0x948   : > { %5799 = vmatpush3.msk.msra.mxu1 %vm1071_vm14, %v4381_v57  ;;  %5800 = vmatprep.mubr.msk.f32.mxu1 %vm7077_vm10, %v5959_v7  ;;  %vm7116_vm7 = vmmov %vm7081_vm1 }
 0x949   : > { %5652 = vmatmul.mubr.msk.f32.vlgmr.msra.gmra.mrb[2].mxu0 %vm7092_vm8, %v3576_v50  ;;  %5803 = vmatprep.subr.mxu1 %v5959_v7  ;;  %v4542_v63 = vpop.permute.xlu0 %4541  ;;  %v4703_v5 = vpop.permute.xlu1 %4702  ;;  %vm7099_vm8 = vmmov %vm7081_vm1 }
 0x94a   : > { %5656 = vmatpush1.msk.msra.mxu0 %vm1071_vm14, %v4221_v59  ;;  %4296 = vmatprep.mubr.f32.mxu0 %v5959_v7  ;;  %v4544_v2 = vsel %vm7096_vm2, %v4540_v61, %v4542_v63  ;;  %vm7103_vm2 = vmmov %vm7081_vm1 }
 0x94b   : > { %5660 = vmatprep.subr.msk.mxu0 %vm1071_vm14, %v4383_v60 }
 0x94d   : > { %v4701_v3 = vpop.permute.xlu0 %4700  ;;  %v4862_v12 = vpop.permute.xlu1 %4861 }
 0x94e   : > { %v4705_v9 = vsel %vm7100_vm11, %v4701_v3, %v4703_v5 }
 0x94f   : > { %5801 = vmatmul.mubr.msk.f32.vlgmr.msra.gmra.mrb[2].mxu1 %vm7094_vm3, %v3578_v62  ;;  %vm7101_vm3 = vmmov %vm7081_vm1 }
 0x950   : > { %5804 = vmatpush3.msk.msra.mxu1 %vm1071_vm14, %v4542_v63  ;;  %5805 = vmatprep.mubr.msk.f32.mxu1 %vm7077_vm10, %v5959_v7 }
 0x951   : > { %5657 = vmatmul.mubr.msk.f32.vlgmr.msra.gmra.mrb[2].mxu0 %vm7081_vm1, %v3577_v56  ;;  %5808 = vmatprep.subr.mxu1 %v5959_v7  ;;  %v4699_v6 = vpop.permute.xlu0 %4698  ;;  %v4860_v16 = vpop.permute.xlu1 %4859 }
 0x952   : > { %5661 = vmatpush1.msk.msra.mxu0 %vm1071_vm14, %v4382_v1  ;;  %4457 = vmatprep.mubr.f32.mxu0 %v5959_v7  ;;  %v4704_v13 = vsel %vm7102_vm12, %v4699_v6, %v4701_v3  ;;  %v4865_v17 = vsel %vm1019_vm15, %v4860_v16, %v4862_v12 }
 0x953   : > { %5665 = vmatprep.subr.msk.mxu0 %vm1071_vm14, %v4544_v2 }
 0x955   : > { %v4864_v11 = vpop.permute.xlu0 %4863 }
 0x956   : > { %v4866_v14 = vsel %vm1019_vm15, %v4862_v12, %v4864_v11  ;;  %vm7115_vm15 = vcmask 15360  }
 0x957   : > { %5806 = vmatmul.mubr.msk.f32.vlgmr.msra.gmra.mrb[2].mxu1 %vm7097_vm4, %v3579_v4  ;;  %vm7105_vm4 = vmmov %vm7081_vm1 }
 0x958   : > { %5809 = vmatpush3.msk.msra.mxu1 %vm1071_vm14, %v4703_v5  ;;  %5810 = vmatprep.mubr.msk.f32.mxu1 %vm7077_vm10, %v5959_v7 }
 0x959   : > { %5662 = vmatmul.mubr.msk.f32.vlgmr.msra.gmra.mrb[2].mxu0 %vm7099_vm8, %v3578_v62  ;;  %5813 = vmatprep.subr.mxu1 %v5959_v7  ;;  %vm7118_vm8 = vcmask 785408  }
 0x95a   : > { %5666 = vmatpush1.msk.msra.mxu0 %vm1071_vm14, %v4543_v8  ;;  %4618 = vmatprep.mubr.f32.mxu0 %v5959_v7  ;;  %vm7120_vm11 = vmmov %vm7118_vm8 }
 0x95b   : > { %5670 = vmatprep.subr.msk.mxu0 %vm1071_vm14, %v4705_v9 }
 0x95f   : > { %5811 = vmatmul.mubr.msk.f32.vlgmr.msra.gmra.mrb[2].mxu1 %vm7101_vm3, %v3580_v10 }
 0x960   : > { %5814 = vmatpush3.msk.msra.mxu1 %vm1071_vm14, %v4864_v11  ;;  %5815 = vmatprep.mubr.msk.f32.mxu1 %vm7077_vm10, %v5959_v7  ;;  %vm7104_vm10 = vmmov %vm7081_vm1 }
 0x961   : > { %5667 = vmatmul.mubr.msk.f32.vlgmr.msra.gmra.mrb[2].mxu0 %vm7081_vm1, %v3579_v4 }
 0x962   : > { %5671 = vmatpush1.msk.msra.mxu0 %vm1071_vm14, %v4704_v13  ;;  %4779 = vmatprep.mubr.f32.mxu0 %v5959_v7 }
 0x963   : > { %5675 = vmatprep.subr.msk.mxu0 %vm1071_vm14, %v4866_v14 }
 0x967   : > { %5816 = vmatmul.mubr.msk.f32.vlgmr.msra.gmra.mrb[2].mxu1 %vm7103_vm2, %v3581_v15 }
 0x969   : > { %5672 = vmatmul.mubr.msk.f32.vlgmr.msra.gmra.mrb[2].mxu0 %vm7104_vm10, %v3580_v10 }
 0x96a   : > { %5676 = vmatpush1.msk.msra.mxu0 %vm1071_vm14, %v4865_v17  ;;  %4940 = vmatprep.mubr.f32.mxu0 %v5959_v7 }
 0x971   : > { %5677 = vmatmul.mubr.msk.f32.vlgmr.msra.gmra.mrb[2].mxu0 %vm7105_vm4, %v3581_v15 }
 0xa3a   : > { %v5013_v18 = vpop.f32.mrb[2].mxu1 }
 0xa3b   : > { %5067 = vrot.lane.b32.xlu0 %v5013_v18, %s5985_s28  ;;  %v5817_v21 = vpop.f32.mrb[3].mxu1 }
 0xa44   : > { %v4942_v22 = vpop.f32.mrb[2].mxu0 }
 0xa45   : > { %5024 = vrot.lane.b32.xlu1 %v4942_v22, %s7074_s22  ;;  %5021 = vrot.lane.b32.xlu0 %v4942_v22, %s7072_s25  ;;  %v4944_v23 = vpop.f32.mrb[3].mxu0  ;;  %s7111_s25 = smov 76   ;;  %s7112_s22 = smov 40  }
 0xa49   : > { %5040 = vrot.lane.b32.xlu1 %v4942_v22, %s5986_s26  ;;  %5027 = vrot.lane.b32.xlu0 %v4942_v22, %s7106_s23  ;;  %s7114_s23 = smov 22  }
 0xa4d   : > { %5030 = vrot.lane.b32.xlu1 %v4942_v22, %s7107_s12  ;;  %5033 = vrot.lane.b32.xlu0 %v4942_v22, %s7108_s19 }
 0xa51   : > { %5036 = vrot.lane.b32.xlu1 %v4942_v22, %s7109_s13  ;;  %5049 = vrot.lane.b32.xlu0 %v4944_v23, %s7110_s24 }
 0xa55   : > { %5055 = vrot.lane.b32.xlu0 %v4944_v23, %s5993_s11  ;;  %5046 = vrot.lane.b32.xlu1 %v4944_v23, %s5952_s15  ;;  %s7117_s11 = smov 80  }
 0xa59   : > { %5042 = vrot.lane.b32.xlu0 %v4944_v23, %s5986_s26  ;;  %5052 = vrot.lane.b32.xlu1 %v4944_v23, %s7111_s25 }
 0xa5d   : > { %5058 = vrot.lane.b32.xlu0 %v4944_v23, %s7112_s22  ;;  %5065 = vrot.lane.b32.xlu1 %v4944_v23, %s5985_s28  ;;  %s7122_s28 = sshll.u32 %s7124_s10, 3 }
 0xa5e   : > { %s400_s13 = scalar_lea.vmem %s6984_s9, %s7122_s28 }
 0xa61   : > { %5071 = vrot.lane.b32.xlu0 %v5013_v18, %s7113_s27  ;;  %5061 = vrot.lane.b32.xlu1 %v4944_v23, %s7114_s23 }
 0xa65   : > { %5419 = vperm.xlu1 %5936, %v5416_v36  }
 0xaad   : > { %v5068_v28 = vpop.permute.xlu0 %5067 }
 0xab7   : > { %v5025_v20 = vpop.permute.xlu1 %5024  ;;  %v5022_v26 = vpop.permute.xlu0 %5021 }
 0xab8   : > { %v5074_v38 = vcombine.low %v4942_v22, %v5025_v20 }
 0xaba   : > { %v5081_v40 = vrot.slane %v5074_v38, %v6100_v24 }
 0xabb   : > { %v5041_v19 = vpop.permute.xlu1 %5040  ;;  %v5028_v32 = vpop.permute.xlu0 %5027 }
 0xabc   : > { %v5082_v37 = vcombine.low %v5022_v26, %v5028_v32 }
 0xabe   : > { %v5089_v41 = vrot.slane %v5082_v37, %v6100_v24 }
 0xabf   : > { %v5031_v42 = vpop.permute.xlu1 %5030  ;;  %v5034_v30 = vpop.permute.xlu0 %5033 }
 0xac0   : > { %v5106_v34 = vcombine.low %v5081_v40, %v5089_v41  ;;  %v5107_v43 = vcombine.high %v5081_v40, %v5089_v41 }
 0xac2   : > { %v5114_v39 = vrot.slane %v5106_v34, %v6106_v35  ;;  %v5121_v44 = vrot.slane %v5107_v43, %v6106_v35 }
 0xac3   : > { %v5037_v45 = vpop.permute.xlu1 %5036  ;;  %v5050_v46 = vpop.permute.xlu0 %5049 }
 0xac4   : > { %v5680_v25 = vcombine.low %v5114_v39, %v5121_v44  ;;  %v5682_v29 = vcombine.high %v5114_v39, %v5121_v44  ;;  %v5090_v51 = vcombine.low %v5031_v42, %v5037_v45 }
 0xac6   : > { %v5218_v47 = vrot.slane %v5680_v25, %v6100_v24  ;;  %v5234_v27 = vrot.slane %v5682_v29, %v6100_v24  ;;  %v5097_v60 = vrot.slane %v5090_v51, %v6100_v24 }
 0xac7   : > { %v5056_v31 = vpop.permute.xlu0 %5055  ;;  %v5047_v48 = vpop.permute.xlu1 %5046 }
 0xac8   : > { %v5243_v49 = vcombine.high %v5218_v47, %v5234_v27  ;;  %v5150_v33 = vcombine.low %v5050_v46, %v5056_v31  ;;  %v5242_v18 = vcombine.low %v5218_v47, %v5234_v27 }
 0xaca   : > { %v5257_v50 = vrot.slane %v5243_v49, %v6106_v35  ;;  %v5157_v57 = vrot.slane %v5150_v33, %v6100_v24  ;;  %v5250_v42 = vrot.slane %v5242_v18, %v6106_v35 }
 0xacb   : > { %v5043_v52 = vpop.permute.xlu0 %5042  ;;  %v5053_v53 = vpop.permute.xlu1 %5052 }
 0xacc   : > { %v5044_v54 = vsel %vm7115_vm15, %v5041_v19, %v5043_v52  ;;  %v5142_v55 = vcombine.low %v5047_v48, %v5053_v53  ;;  %5351 = vrot.lane.b32.xlu0 %v5257_v50, %s5958_s21  ;;  %v5275_v59 = vcombine.high %v5257_v50, %v5959_v7  ;;  %v5274_v25 = vcombine.high %v5250_v42, %v5959_v7 }
 0xacd   : > { %v5098_v56 = vcombine.low %v5034_v30, %v5044_v54 }
 0xace   : > { %v5149_v58 = vrot.slane %v5142_v55, %v6100_v24 }
 0xacf   : > { %v5105_v61 = vrot.slane %v5098_v56, %v6100_v24  ;;  %v5059_v62 = vpop.permute.xlu0 %5058  ;;  %v5066_v63 = vpop.permute.xlu1 %5065 }
 0xad0   : > { %v5174_v0 = vcombine.low %v5149_v58, %v5157_v57  ;;  %v5175_v1 = vcombine.high %v5149_v58, %v5157_v57  ;;  %v5069_v2 = vsel %vm7116_vm7, %v5066_v63, %v5068_v28  ;;  %5355 = vrot.lane.b32.xlu0 %v5275_v59, %s5954_s17 }
 0xad1   : > { %v5122_v3 = vcombine.low %v5097_v60, %v5105_v61  ;;  %v5123_v4 = vcombine.high %v5097_v60, %v5105_v61  ;;  %v5158_v6 = vcombine.low %v5059_v62, %v5069_v2 }
 0xad2   : > { %v5182_v5 = vrot.slane %v5174_v0, %v6106_v35  ;;  %v5189_v8 = vrot.slane %v5175_v1, %v6106_v35 }
 0xad3   : > { %v5130_v9 = vrot.slane %v5122_v3, %v6106_v35  ;;  %v5137_v10 = vrot.slane %v5123_v4, %v6106_v35  ;;  %v5072_v11 = vpop.permute.xlu0 %5071  ;;  %v5062_v12 = vpop.permute.xlu1 %5061  ;;  %v5165_v23 = vrot.slane %v5158_v6, %v6100_v24 }
 0xad4   : > { %v5684_v13 = vcombine.low %v5182_v5, %v5189_v8  ;;  %v5686_v14 = vcombine.high %v5182_v5, %v5189_v8  ;;  %v5166_v15 = vcombine.low %v5062_v12, %v5072_v11 }
 0xad5   : > { %v5681_v16 = vcombine.low %v5130_v9, %v5137_v10  ;;  %v5683_v17 = vcombine.high %v5130_v9, %v5137_v10 }
 0xad6   : > { %v5286_v21 = vrot.slane %v5684_v13, %v6100_v24  ;;  %v5302_v22 = vrot.slane %v5686_v14, %v6100_v24  ;;  %v5173_v36 = vrot.slane %v5166_v15, %v6100_v24 }
 0xad7   : > { %v5225_v28 = vrot.slane %v5681_v16, %v6100_v24  ;;  %v5241_v20 = vrot.slane %v5683_v17, %v6100_v24 }
 0xad8   : > { %v5190_v26 = vcombine.low %v5165_v23, %v5173_v36  ;;  %v5191_v38 = vcombine.high %v5165_v23, %v5173_v36  ;;  %v5311_v19 = vcombine.high %v5286_v21, %v5302_v22  ;;  %v5310_v43 = vcombine.low %v5286_v21, %v5302_v22 }
 0xad9   : > { %v5258_v32 = vcombine.low %v5225_v28, %v5241_v20  ;;  %v5259_v34 = vcombine.high %v5225_v28, %v5241_v20 }
 0xada   : > { %v5198_v37 = vrot.slane %v5190_v26, %v6106_v35  ;;  %v5205_v40 = vrot.slane %v5191_v38, %v6106_v35  ;;  %v5325_v41 = vrot.slane %v5311_v19, %v6106_v35  ;;  %v5318_v47 = vrot.slane %v5310_v43, %v6106_v35 }
 0xadb   : > { %v5266_v30 = vrot.slane %v5258_v32, %v6106_v35  ;;  %v5273_v29 = vrot.slane %v5259_v34, %v6106_v35 }
 0xadc   : > { %v5685_v39 = vcombine.low %v5198_v37, %v5205_v40  ;;  %v5687_v44 = vcombine.high %v5198_v37, %v5205_v40  ;;  %5379 = vrot.lane.b32.xlu1 %v5325_v41, %s5958_s21  ;;  %v5342_v49 = vcombine.high %v5318_v47, %v5959_v7  ;;  %v5343_v50 = vcombine.high %v5325_v41, %v5959_v7  ;;  %s395_s21 = scalar_lea.vmem %s6983_s8, %s6520_s29 }
 0xadd   : > { %5359 = vrot.lane.b32.xlu0 %v5266_v30, %s5957_s20  ;;  %v5276_v33 = vcombine.high %v5266_v30, %v5959_v7  ;;  %v5277_v51 = vcombine.high %v5273_v29, %v5959_v7  ;;  %v5452_v30 = vld [vmem:[%s395_s21] sm:$0xf] }
 0xade   : > { %v5293_v45 = vrot.slane %v5685_v39, %v6100_v24  ;;  %v5309_v46 = vrot.slane %v5687_v44, %v6100_v24 }
 0xae0   : > { %5347 = vrot.lane.b32.xlu1 %v5274_v25, %s5953_s16  ;;  %v5326_v27 = vcombine.low %v5293_v45, %v5309_v46  ;;  %v5327_v48 = vcombine.high %v5293_v45, %v5309_v46 }
 0xae1   : > { %5367 = vrot.lane.b32.xlu0 %v5273_v29, %s5955_s18 }
 0xae2   : > { %v5334_v31 = vrot.slane %v5326_v27, %v6106_v35  ;;  %v5341_v24 = vrot.slane %v5327_v48, %v6106_v35 }
 0xae4   : > { %5387 = vrot.lane.b32.xlu1 %v5334_v31, %s5957_s20  ;;  %v5344_v52 = vcombine.high %v5334_v31, %v5959_v7  ;;  %v5345_v35 = vcombine.high %v5341_v24, %v5959_v7  ;;  %v5420_v54 = vpop.permute.xlu1 %5419 }
 0xae5   : > { %5375 = vrot.lane.b32.xlu0 %v5342_v49, %s5953_s16 }
 0xae8   : > { %5395 = vrot.lane.b32.xlu1 %v5341_v24, %s5955_s18  ;;  %v5943_v24 = vld [vmem:[%s6064_s14] sm:$0xff] }
 0xae9   : > { %5363 = vrot.lane.b32.xlu0 %v5276_v33, %s7117_s11 }
 0xaec   : > { %5383 = vrot.lane.b32.xlu1 %v5343_v50, %s5954_s17  ;;  %s391_s17 = scalar_lea.vmem %s6982_s7, %s6520_s29 }
 0xaed   : > { %5371 = vrot.lane.b32.xlu0 %v5277_v51, %s5952_s15  ;;  %v5444_v28 = vld [vmem:[%s391_s17] sm:$0xf] }
 0xaf0   : > { %5391 = vrot.lane.b32.xlu1 %v5344_v52, %s7117_s11 }
 0xaf4   : > { %5399 = vrot.lane.b32.xlu1 %v5345_v35, %s5952_s15 }
 0xb3e   : > { %v5352_v53 = vpop.permute.xlu0 %5351 }
 0xb42   : > { %v5356_v55 = vpop.permute.xlu0 %5355 }
 0xb4e   : > { %v5380_v56 = vpop.permute.xlu1 %5379 }
 0xb4f   : > { %v5360_v57 = vpop.permute.xlu0 %5359 }
 0xb52   : > { %v5348_v58 = vpop.permute.xlu1 %5347 }
 0xb53   : > { %v5368_v59 = vpop.permute.xlu0 %5367  ;;  %v5402_v60 = vsel %vm411_vm0, %v5250_v42, %v5348_v58 }
 0xb54   : > { %v5403_v63 = vsel %vm1040_vm6, %v5402_v60, %v5352_v53 }
 0xb55   : > { %v5404_v7 = vsel %vm2885_vm5, %v5403_v63, %v5356_v55 }
 0xb56   : > { %v5388_v61 = vpop.permute.xlu1 %5387  ;;  %v5405_v3 = vsel %vm2887_vm13, %v5404_v7, %v5360_v57 }
 0xb57   : > { %v5376_v62 = vpop.permute.xlu0 %5375 }
 0xb58   : > { %v5409_v1 = vsel %vm411_vm0, %v5318_v47, %v5376_v62  ;;  %vm7119_vm0 = vcmask 916480  }
 0xb59   : > { %v5410_v4 = vsel %vm1040_vm6, %v5409_v1, %v5380_v56  ;;  %vm7121_vm6 = vmmov %vm7119_vm0 }
 0xb5a   : > { %v5396_v0 = vpop.permute.xlu1 %5395 }
 0xb5b   : > { %v5364_v2 = vpop.permute.xlu0 %5363 }
 0xb5c   : > { %v5406_v8 = vsel %vm2889_vm9, %v5405_v3, %v5364_v2 }
 0xb5d   : > { %v5407_v10 = vsel %vm7118_vm8, %v5406_v8, %v5368_v59 }
 0xb5e   : > { %v5384_v5 = vpop.permute.xlu1 %5383 }
 0xb5f   : > { %v5411_v6 = vsel %vm2885_vm5, %v5410_v4, %v5384_v5  ;;  %v5372_v9 = vpop.permute.xlu0 %5371 }
 0xb60   : > { %v5412_v11 = vsel %vm2887_vm13, %v5411_v6, %v5388_v61  ;;  %v5408_v13 = vsel %vm7119_vm0, %v5407_v10, %v5372_v9 }
 0xb61   : > { %v5422_v15 = vadd.f32 %v5420_v54, %v5408_v13 }
 0xb62   : > { %v5392_v12 = vpop.permute.xlu1 %5391 }
 0xb63   : > { %v5413_v14 = vsel %vm2889_vm9, %v5412_v11, %v5392_v12  ;;  %v5424_v22 = vsel %vm1071_vm14, %v5422_v15, 0.0 }
 0xb64   : > { %v5414_v16 = vsel %vm7120_vm11, %v5413_v14, %v5396_v0 }
 0xb66   : > { %v5400_v17 = vpop.permute.xlu1 %5399 }
 0xb67   : > { %v5415_v18 = vsel %vm7121_vm6, %v5414_v16, %v5400_v17 }
 0xb68   : > { %v5423_v21 = vadd.f32 %v5420_v54, %v5415_v18 }
 0xb6a   : > { %v5425_v23 = vsel %vm1071_vm14, %v5423_v21, 0.0 }
 0xb6b   : > { %v5426_v36 = vadd.f32 %v5425_v23, %v5424_v22 }
 0xb6d   : > { %5427 = vadd.xlane.f32.xlu0 %v5426_v36 }
 0xb83   : > { %5447 = vperm.xlu0 %5937, %v5444_v28  }
 0xbfa   : > { %v5428_v20 = vpop.xlane.xlu0 %5427 }
 0xbfb   : > { %v5429_v26 = vmul.f32 0.00390625, %v5428_v20 }
 0xbfd   : > { %v5430_v38 = vsub.f32 %v5422_v15, %v5429_v26  ;;  %v5431_v19 = vsub.f32 %v5423_v21, %v5429_v26 }
 0xbff   : > { %v5432_v32 = vmul.f32 %v5430_v38, %v5430_v38  ;;  %v5433_v37 = vmul.f32 %v5431_v19, %v5431_v19 }
 0xc01   : > { %v5434_v40 = vsel %vm1071_vm14, %v5432_v32, 0.0  ;;  %v5435_v41 = vsel %vm1071_vm14, %v5433_v37, 0.0 }
 0xc02   : > { %v5436_v42 = vadd.f32 %v5435_v41, %v5434_v40  ;;  %v5448_v25 = vpop.permute.xlu0 %5447 }
 0xc04   : > { %5437 = vadd.xlane.f32.xlu1 %v5436_v42 }
 0xc15   : > { %5455 = vperm.xlu1 %5936, %v5452_v30  }
 0xc91   : > { %v5438_v34 = vpop.xlane.xlu1 %5437 }
 0xc92   : > { %v5439_v43 = vmul.f32 0.00390625, %v5438_v34 }
 0xc94   : > { %v5440_v39 = vadd.f32 1e-08, %v5439_v43 }
 0xc95   : > { %v5456_v27 = vpop.permute.xlu1 %5455 }
 0xc96   : > { %5941 = vrsqrt.f32 %v5440_v39 }
 0xca0   : > { %v5942_v44 = vpop.eup %5941 }
 0xca1   : > { %v5442_v45 = vmul.f32 %v5942_v44, %v5430_v38  ;;  %v5443_v46 = vmul.f32 %v5942_v44, %v5431_v19 }
 0xca3   : > { %v5450_v29 = vmul.f32 %v5448_v25, %v5442_v45  ;;  %v5451_v47 = vmul.f32 %v5448_v25, %v5443_v46 }
 0xca5   : > { %v5458_v31 = vadd.f32 %v5456_v27, %v5450_v29  ;;  %v5459_v48 = vadd.f32 %v5456_v27, %v5451_v47 }
 0xca7   : > { %v5462_v49 = vcombine.low %v5458_v31, %v5459_v48 }
 0xca9   : > { %v5464_v33 = vadd.f32 %v5943_v24, %v5462_v49 }
 0xcab   : > { %5465 = vst [vmem:[%s400_s13] sm:$0xff] %v5464_v33 }
 0xcac PF: > { %s19_s30 = sadd.s32 1, %s5950_s30  }
 0xcad   : > { %p16_p4 = scmp.ge.s32.totalorder %s19_s30, 4  }
 0xcaf   :  { %18 = sbr.rel (!%p16_p4) target bundleno = 1 (0x1), region = 98 }

</bundles_post_ra>
